<compile_context>
chip_gen: v7x
topology: tpu7x:2x2x1
jax: 0.10.0
libtpu: 0.0.40
codegen_flags: <defaults>
</compile_context>

<pallas_src>
import jax
import jax.numpy as jnp
from jax.experimental import pallas as pl

# ----------------------------- model sizes -----------------------------------
B = 2            # batch
T = 8            # encoder sequence length
N = 4            # num_nodes (stocks)
F = 3            # encoder_input_dim (features per node)
DEC_IN = 1       # decoder_input_dim (decoder feeds its own output back)
HGCN = 8         # gcn_hidden_dim
HG = 16          # gru_hidden_dim
FS = 4           # forecast_steps

NF = N * F
NH = N * HGCN
H3 = 3 * HG


# ----------------------------- fused Pallas kernel ----------------------------
def _fused_kernel(x_ref, genc_ref, bgenc_ref, ewih_ref, ebih_ref, ewhh_ref, ebhh_ref,
                  inp0_ref, gdec_ref, bgdec_ref, dwih_ref, dbih_ref, dwhh_ref, dbhh_ref,
                  wfc_ref, bfc_ref, out_ref):
    f32 = jnp.float32

    # ---- hoisted (non-recurrent) encoder work, all T*B rows at once ----
    # GCN (adjacency folded into genc) + ReLU, then input->hidden gate projection.
    emb_all = jnp.maximum(
        jnp.dot(x_ref[...], genc_ref[...], preferred_element_type=f32) + bgenc_ref[...],
        0.0)                                                           # (T*B, NH)
    gi_all = jnp.dot(emb_all, ewih_ref[...],
                     preferred_element_type=f32) + ebih_ref[...]       # (T*B, 3*HG)

    e_whh = ewhh_ref[...]                                              # (HG, 3*HG)
    e_bhh = ebhh_ref[...]                                              # (1, 3*HG)

    # ---- serial encoder recurrence: only h @ Whh + elementwise per step ----
    h = jnp.zeros((B, HG), f32)
    for t in range(T):
        gi = gi_all[t * B:(t + 1) * B, :]                              # (B, 3*HG) static slice
        gh = jnp.dot(h, e_whh, preferred_element_type=f32) + e_bhh
        r = jax.nn.sigmoid(gi[:, :HG] + gh[:, :HG])
        z = jax.nn.sigmoid(gi[:, HG:2 * HG] + gh[:, HG:2 * HG])
        n = jnp.tanh(gi[:, 2 * HG:] + r * gh[:, 2 * HG:])
        h = (1.0 - z) * n + z * h

    # ---- decoder: autoregressive, FS unrolled steps ----
    g_dec, bg_dec = gdec_ref[...], bgdec_ref[...]
    d_wih, d_bih = dwih_ref[...], dbih_ref[...]
    d_whh, d_bhh = dwhh_ref[...], dbhh_ref[...]
    wfc, bfc = wfc_ref[...], bfc_ref[...]

    inp = inp0_ref[...]                                                # (B, N)
    for t in range(FS):
        emb = jnp.maximum(
            jnp.dot(inp, g_dec, preferred_element_type=f32) + bg_dec, 0.0)     # (B, NH)
        gi = jnp.dot(emb, d_wih, preferred_element_type=f32) + d_bih
        gh = jnp.dot(h, d_whh, preferred_element_type=f32) + d_bhh
        r = jax.nn.sigmoid(gi[:, :HG] + gh[:, :HG])
        z = jax.nn.sigmoid(gi[:, HG:2 * HG] + gh[:, HG:2 * HG])
        n = jnp.tanh(gi[:, 2 * HG:] + r * gh[:, 2 * HG:])
        h = (1.0 - z) * n + z * h
        out = jnp.dot(h, wfc, preferred_element_type=f32) + bfc        # (B, N)
        out_ref[t] = out                                               # VMEM-resident; HBM flush once
        inp = out                                                      # autoregressive feedback


# ----------------------------- wrapper ----------------------------------------
def grn_seq2seq_forward(x, dec_init, a_norm, p):
    """x: (B,T,N,F) f32, dec_init: (B,N,1) f32, a_norm: (N,N) normalized adjacency."""
    f32 = jnp.float32

    # --- parameter setup (plain-JAX glue): fold GCN adjacency into weights -----
    g_enc = jnp.kron(a_norm.T, p["enc_gcn_w"]).astype(f32)             # (N*F, N*HGCN)
    bg_enc = jnp.tile(p["enc_gcn_b"], N).reshape(1, NH).astype(f32)
    g_dec = jnp.kron(a_norm.T, p["dec_gcn_w"]).astype(f32)             # (N*1, N*HGCN)
    bg_dec = jnp.tile(p["dec_gcn_b"], N).reshape(1, NH).astype(f32)

    # torch GRU layout (3H, in), gate order r,z,n -> stacked along output dim
    e_wih = p["enc_wih"].T.astype(f32)                                 # (NH, 3*HG)
    e_whh = p["enc_whh"].T.astype(f32)                                 # (HG, 3*HG)
    e_bih = p["enc_bih"].reshape(1, H3).astype(f32)
    e_bhh = p["enc_bhh"].reshape(1, H3).astype(f32)
    d_wih = p["dec_wih"].T.astype(f32)
    d_whh = p["dec_whh"].T.astype(f32)
    d_bih = p["dec_bih"].reshape(1, H3).astype(f32)
    d_bhh = p["dec_bhh"].reshape(1, H3).astype(f32)
    wfc_t = p["fc_w"].T.astype(f32)                                    # (HG, N)
    bfc = p["fc_b"].reshape(1, N).astype(f32)

    # time-major flattened input: row t*B + b holds x[b, t].reshape(N*F)
    x_flat = jnp.transpose(x, (1, 0, 2, 3)).reshape(T * B, NF).astype(f32)
    inp0 = dec_init[..., 0].astype(f32)                                # (B, N)

    out_fbn = pl.pallas_call(
        _fused_kernel,
        out_shape=jax.ShapeDtypeStruct((FS, B, N), f32),
    )(x_flat, g_enc, bg_enc, e_wih, e_bih, e_whh, e_bhh,
      inp0, g_dec, bg_dec, d_wih, d_bih, d_whh, d_bhh, wfc_t, bfc)

    return jnp.transpose(out_fbn, (1, 0, 2))                           # (B, FS, N)


# ----------------------------- pure-JAX reference ------------------------------
def reference_forward(x, dec_init, a_norm, p):
    def gru_step(xt, h, wih, whh, bih, bhh):
        gi = xt @ wih.T + bih
        gh = h @ whh.T + bhh
        r = jax.nn.sigmoid(gi[:, :HG] + gh[:, :HG])
        z = jax.nn.sigmoid(gi[:, HG:2 * HG] + gh[:, HG:2 * HG])
        n = jnp.tanh(gi[:, 2 * HG:] + r * gh[:, 2 * HG:])
        return (1.0 - z) * n + z * h

    h = jnp.zeros((B, HG), jnp.float32)
    for t in range(T):
        embs = [jax.nn.relu(a_norm @ (x[b, t] @ p["enc_gcn_w"]) + p["enc_gcn_b"]).reshape(-1)
                for b in range(B)]
        h = gru_step(jnp.stack(embs), h, p["enc_wih"], p["enc_whh"], p["enc_bih"], p["enc_bhh"])

    inp = dec_init                                                     # (B, N, 1)
    outs = []
    for _t in range(FS):
        embs = [jax.nn.relu(a_norm @ (inp[b] @ p["dec_gcn_w"]) + p["dec_gcn_b"]).reshape(-1)
                for b in range(B)]
        h = gru_step(jnp.stack(embs), h, p["dec_wih"], p["dec_whh"], p["dec_bih"], p["dec_bhh"])
        out = h @ p["fc_w"].T + p["fc_b"]
        outs.append(out)
        inp = out[..., None]
    return jnp.stack(outs, axis=1)                                     # (B, FS, N)


# ----------------------------- setup / main -----------------------------------
def gcn_norm_adj(edge_index, num_nodes):
    """GCNConv normalization: D^{-1/2} (A + I) D^{-1/2} (aggregate src -> dst)."""
    a = jnp.zeros((num_nodes, num_nodes), jnp.float32)
    a = a.at[edge_index[1], edge_index[0]].set(1.0)
    a = a + jnp.eye(num_nodes, dtype=jnp.float32)
    dinv = 1.0 / jnp.sqrt(a.sum(axis=1))
    return a * dinv[:, None] * dinv[None, :]


if __name__ == "__main__":
    key = jax.random.PRNGKey(0)
    ks = jax.random.split(key, 18)

    def u(k, shape, scale=0.2):
        return jax.random.uniform(k, shape, jnp.float32, -scale, scale)

    params = dict(
        enc_gcn_w=u(ks[0], (F, HGCN)),
        enc_gcn_b=u(ks[1], (HGCN,)),
        enc_wih=u(ks[2], (3 * HG, N * HGCN)),
        enc_whh=u(ks[3], (3 * HG, HG)),
        enc_bih=u(ks[4], (3 * HG,)),
        enc_bhh=u(ks[5], (3 * HG,)),
        dec_gcn_w=u(ks[6], (DEC_IN, HGCN)),
        dec_gcn_b=u(ks[7], (HGCN,)),
        dec_wih=u(ks[8], (3 * HG, N * HGCN)),
        dec_whh=u(ks[9], (3 * HG, HG)),
        dec_bih=u(ks[10], (3 * HG,)),
        dec_bhh=u(ks[11], (3 * HG,)),
        fc_w=u(ks[12], (N, HG)),
        fc_b=u(ks[13], (N,)),
    )

    x = u(ks[14], (B, T, N, F), scale=1.0)
    dec_init = u(ks[15], (B, N, DEC_IN), scale=1.0)
    # bidirectional ring graph over the N=4 stocks
    edge_index = jnp.array([[0, 1, 1, 2, 2, 3, 3, 0],
                            [1, 0, 2, 1, 3, 2, 0, 3]], dtype=jnp.int32)
    a_norm = gcn_norm_adj(edge_index, N)

    # TODO(synk): teacher forcing uses python `random.random()`; with targets=None
    # (deterministic inference path) it never triggers, so it is intentionally not modeled.
    out = jax.block_until_ready(grn_seq2seq_forward(x, dec_init, a_norm, params))
    ref = jax.block_until_ready(reference_forward(x, dec_init, a_norm, params))

    assert out.shape == (B, FS, N), out.shape
    assert jnp.allclose(out, ref, rtol=1e-4, atol=1e-4), (out, ref)
    print("KERNEL_OK")
</pallas_src>

<mosaic_0001>
module attributes {stable_mosaic.version = 11 : i64} {
  func.func @_fused_kernel(%arg0: memref<16x12xf32, #tpu.memory_space<vmem>>, %arg1: memref<12x32xf32, #tpu.memory_space<vmem>>, %arg2: memref<1x32xf32, #tpu.memory_space<vmem>>, %arg3: memref<32x48xf32, #tpu.memory_space<vmem>>, %arg4: memref<1x48xf32, #tpu.memory_space<vmem>>, %arg5: memref<16x48xf32, #tpu.memory_space<vmem>>, %arg6: memref<1x48xf32, #tpu.memory_space<vmem>>, %arg7: memref<2x4xf32, #tpu.memory_space<vmem>>, %arg8: memref<4x32xf32, #tpu.memory_space<vmem>>, %arg9: memref<1x32xf32, #tpu.memory_space<vmem>>, %arg10: memref<32x48xf32, #tpu.memory_space<vmem>>, %arg11: memref<1x48xf32, #tpu.memory_space<vmem>>, %arg12: memref<16x48xf32, #tpu.memory_space<vmem>>, %arg13: memref<1x48xf32, #tpu.memory_space<vmem>>, %arg14: memref<16x4xf32, #tpu.memory_space<vmem>>, %arg15: memref<1x4xf32, #tpu.memory_space<vmem>>, %arg16: memref<4x2x4xf32, #tpu.memory_space<vmem>>) attributes {dimension_semantics = [], scalar_prefetch = 0 : i64, scratch_operands = 0 : i64, tpu.core_type = #tpu.core_type<tc>} {
    %c0 = arith.constant 0 : index
    %c0_0 = arith.constant 0 : index
    %0 = vector.load %arg0[%c0, %c0_0] : memref<16x12xf32, #tpu.memory_space<vmem>>, vector<16x12xf32>
    %c0_1 = arith.constant 0 : index
    %c0_2 = arith.constant 0 : index
    %1 = vector.load %arg1[%c0_1, %c0_2] : memref<12x32xf32, #tpu.memory_space<vmem>>, vector<12x32xf32>
    %cst = arith.constant dense<0.000000e+00> : vector<16x32xf32>
    %2 = tpu.matmul %0, %1, %cst {dimension_numbers = #tpu.dot_dimension_numbers<[1], [0], [0], [1], [0, 0, 1, 1], [], []>} : vector<16x12xf32>, vector<12x32xf32>, vector<16x32xf32> -> vector<16x32xf32>
    %c0_3 = arith.constant 0 : index
    %c0_4 = arith.constant 0 : index
    %3 = vector.load %arg2[%c0_3, %c0_4] : memref<1x32xf32, #tpu.memory_space<vmem>>, vector<1x32xf32>
    %4 = vector.broadcast %3 : vector<1x32xf32> to vector<16x32xf32>
    %5 = arith.addf %2, %4 : vector<16x32xf32>
    %cst_5 = arith.constant 0.000000e+00 : f32
    %6 = vector.broadcast %cst_5 : f32 to vector<16x32xf32>
    %7 = arith.maximumf %5, %6 : vector<16x32xf32>
    %c0_6 = arith.constant 0 : index
    %c0_7 = arith.constant 0 : index
    %8 = vector.load %arg3[%c0_6, %c0_7] : memref<32x48xf32, #tpu.memory_space<vmem>>, vector<32x48xf32>
    %cst_8 = arith.constant dense<0.000000e+00> : vector<16x48xf32>
    %9 = tpu.matmul %7, %8, %cst_8 {dimension_numbers = #tpu.dot_dimension_numbers<[1], [0], [0], [1], [0, 0, 1, 1], [], []>} : vector<16x32xf32>, vector<32x48xf32>, vector<16x48xf32> -> vector<16x48xf32>
    %c0_9 = arith.constant 0 : index
    %c0_10 = arith.constant 0 : index
    %10 = vector.load %arg4[%c0_9, %c0_10] : memref<1x48xf32, #tpu.memory_space<vmem>>, vector<1x48xf32>
    %11 = vector.broadcast %10 : vector<1x48xf32> to vector<16x48xf32>
    %12 = arith.addf %9, %11 : vector<16x48xf32>
    %c0_11 = arith.constant 0 : index
    %c0_12 = arith.constant 0 : index
    %13 = vector.load %arg5[%c0_11, %c0_12] : memref<16x48xf32, #tpu.memory_space<vmem>>, vector<16x48xf32>
    %c0_13 = arith.constant 0 : index
    %c0_14 = arith.constant 0 : index
    %14 = vector.load %arg6[%c0_13, %c0_14] : memref<1x48xf32, #tpu.memory_space<vmem>>, vector<1x48xf32>
    %cst_15 = arith.constant 0.000000e+00 : f32
    %15 = vector.broadcast %cst_15 : f32 to vector<2x16xf32>
    %16 = vector.extract_strided_slice %12 {offsets = [0, 0], sizes = [2, 48], strides = [1, 1]} : vector<16x48xf32> to vector<2x48xf32>
    %cst_16 = arith.constant dense<0.000000e+00> : vector<2x48xf32>
    %17 = tpu.matmul %15, %13, %cst_16 {dimension_numbers = #tpu.dot_dimension_numbers<[1], [0], [0], [1], [0, 0, 1, 1], [], []>} : vector<2x16xf32>, vector<16x48xf32>, vector<2x48xf32> -> vector<2x48xf32>
    %18 = vector.broadcast %14 : vector<1x48xf32> to vector<2x48xf32>
    %19 = arith.addf %17, %18 : vector<2x48xf32>
    %20 = vector.extract_strided_slice %16 {offsets = [0, 0], sizes = [2, 16], strides = [1, 1]} : vector<2x48xf32> to vector<2x16xf32>
    %21 = vector.extract_strided_slice %19 {offsets = [0, 0], sizes = [2, 16], strides = [1, 1]} : vector<2x48xf32> to vector<2x16xf32>
    %22 = arith.addf %20, %21 : vector<2x16xf32>
    %23 = arith.negf %22 : vector<2x16xf32>
    %24 = math.exp %23 : vector<2x16xf32>
    %cst_17 = arith.constant 1.000000e+00 : f32
    %25 = vector.broadcast %cst_17 : f32 to vector<2x16xf32>
    %26 = arith.addf %25, %24 : vector<2x16xf32>
    %27 = arith.divf %25, %26 : vector<2x16xf32>
    %28 = vector.extract_strided_slice %16 {offsets = [0, 16], sizes = [2, 16], strides = [1, 1]} : vector<2x48xf32> to vector<2x16xf32>
    %29 = vector.extract_strided_slice %19 {offsets = [0, 16], sizes = [2, 16], strides = [1, 1]} : vector<2x48xf32> to vector<2x16xf32>
    %30 = arith.addf %28, %29 : vector<2x16xf32>
    %31 = arith.negf %30 : vector<2x16xf32>
    %32 = math.exp %31 : vector<2x16xf32>
    %cst_18 = arith.constant 1.000000e+00 : f32
    %33 = vector.broadcast %cst_18 : f32 to vector<2x16xf32>
    %34 = arith.addf %33, %32 : vector<2x16xf32>
    %35 = arith.divf %33, %34 : vector<2x16xf32>
    %36 = vector.extract_strided_slice %16 {offsets = [0, 32], sizes = [2, 16], strides = [1, 1]} : vector<2x48xf32> to vector<2x16xf32>
    %37 = vector.extract_strided_slice %19 {offsets = [0, 32], sizes = [2, 16], strides = [1, 1]} : vector<2x48xf32> to vector<2x16xf32>
    %38 = arith.mulf %27, %37 : vector<2x16xf32>
    %39 = arith.addf %36, %38 : vector<2x16xf32>
    %40 = math.tanh %39 : vector<2x16xf32>
    %cst_19 = arith.constant 1.000000e+00 : f32
    %41 = vector.broadcast %cst_19 : f32 to vector<2x16xf32>
    %42 = arith.subf %41, %35 : vector<2x16xf32>
    %43 = arith.mulf %42, %40 : vector<2x16xf32>
    %44 = arith.mulf %35, %15 : vector<2x16xf32>
    %45 = arith.addf %43, %44 : vector<2x16xf32>
    %46 = vector.extract_strided_slice %12 {offsets = [2, 0], sizes = [2, 48], strides = [1, 1]} : vector<16x48xf32> to vector<2x48xf32>
    %cst_20 = arith.constant dense<0.000000e+00> : vector<2x48xf32>
    %47 = tpu.matmul %45, %13, %cst_20 {dimension_numbers = #tpu.dot_dimension_numbers<[1], [0], [0], [1], [0, 0, 1, 1], [], []>} : vector<2x16xf32>, vector<16x48xf32>, vector<2x48xf32> -> vector<2x48xf32>
    %48 = vector.broadcast %14 : vector<1x48xf32> to vector<2x48xf32>
    %49 = arith.addf %47, %48 : vector<2x48xf32>
    %50 = vector.extract_strided_slice %46 {offsets = [0, 0], sizes = [2, 16], strides = [1, 1]} : vector<2x48xf32> to vector<2x16xf32>
    %51 = vector.extract_strided_slice %49 {offsets = [0, 0], sizes = [2, 16], strides = [1, 1]} : vector<2x48xf32> to vector<2x16xf32>
    %52 = arith.addf %50, %51 : vector<2x16xf32>
    %53 = arith.negf %52 : vector<2x16xf32>
    %54 = math.exp %53 : vector<2x16xf32>
    %cst_21 = arith.constant 1.000000e+00 : f32
    %55 = vector.broadcast %cst_21 : f32 to vector<2x16xf32>
    %56 = arith.addf %55, %54 : vector<2x16xf32>
    %57 = arith.divf %55, %56 : vector<2x16xf32>
    %58 = vector.extract_strided_slice %46 {offsets = [0, 16], sizes = [2, 16], strides = [1, 1]} : vector<2x48xf32> to vector<2x16xf32>
    %59 = vector.extract_strided_slice %49 {offsets = [0, 16], sizes = [2, 16], strides = [1, 1]} : vector<2x48xf32> to vector<2x16xf32>
    %60 = arith.addf %58, %59 : vector<2x16xf32>
    %61 = arith.negf %60 : vector<2x16xf32>
    %62 = math.exp %61 : vector<2x16xf32>
    %cst_22 = arith.constant 1.000000e+00 : f32
    %63 = vector.broadcast %cst_22 : f32 to vector<2x16xf32>
    %64 = arith.addf %63, %62 : vector<2x16xf32>
    %65 = arith.divf %63, %64 : vector<2x16xf32>
    %66 = vector.extract_strided_slice %46 {offsets = [0, 32], sizes = [2, 16], strides = [1, 1]} : vector<2x48xf32> to vector<2x16xf32>
    %67 = vector.extract_strided_slice %49 {offsets = [0, 32], sizes = [2, 16], strides = [1, 1]} : vector<2x48xf32> to vector<2x16xf32>
    %68 = arith.mulf %57, %67 : vector<2x16xf32>
    %69 = arith.addf %66, %68 : vector<2x16xf32>
    %70 = math.tanh %69 : vector<2x16xf32>
    %cst_23 = arith.constant 1.000000e+00 : f32
    %71 = vector.broadcast %cst_23 : f32 to vector<2x16xf32>
    %72 = arith.subf %71, %65 : vector<2x16xf32>
    %73 = arith.mulf %72, %70 : vector<2x16xf32>
    %74 = arith.mulf %65, %45 : vector<2x16xf32>
    %75 = arith.addf %73, %74 : vector<2x16xf32>
    %76 = vector.extract_strided_slice %12 {offsets = [4, 0], sizes = [2, 48], strides = [1, 1]} : vector<16x48xf32> to vector<2x48xf32>
    %cst_24 = arith.constant dense<0.000000e+00> : vector<2x48xf32>
    %77 = tpu.matmul %75, %13, %cst_24 {dimension_numbers = #tpu.dot_dimension_numbers<[1], [0], [0], [1], [0, 0, 1, 1], [], []>} : vector<2x16xf32>, vector<16x48xf32>, vector<2x48xf32> -> vector<2x48xf32>
    %78 = vector.broadcast %14 : vector<1x48xf32> to vector<2x48xf32>
    %79 = arith.addf %77, %78 : vector<2x48xf32>
    %80 = vector.extract_strided_slice %76 {offsets = [0, 0], sizes = [2, 16], strides = [1, 1]} : vector<2x48xf32> to vector<2x16xf32>
    %81 = vector.extract_strided_slice %79 {offsets = [0, 0], sizes = [2, 16], strides = [1, 1]} : vector<2x48xf32> to vector<2x16xf32>
    %82 = arith.addf %80, %81 : vector<2x16xf32>
    %83 = arith.negf %82 : vector<2x16xf32>
    %84 = math.exp %83 : vector<2x16xf32>
    %cst_25 = arith.constant 1.000000e+00 : f32
    %85 = vector.broadcast %cst_25 : f32 to vector<2x16xf32>
    %86 = arith.addf %85, %84 : vector<2x16xf32>
    %87 = arith.divf %85, %86 : vector<2x16xf32>
    %88 = vector.extract_strided_slice %76 {offsets = [0, 16], sizes = [2, 16], strides = [1, 1]} : vector<2x48xf32> to vector<2x16xf32>
    %89 = vector.extract_strided_slice %79 {offsets = [0, 16], sizes = [2, 16], strides = [1, 1]} : vector<2x48xf32> to vector<2x16xf32>
    %90 = arith.addf %88, %89 : vector<2x16xf32>
    %91 = arith.negf %90 : vector<2x16xf32>
    %92 = math.exp %91 : vector<2x16xf32>
    %cst_26 = arith.constant 1.000000e+00 : f32
    %93 = vector.broadcast %cst_26 : f32 to vector<2x16xf32>
    %94 = arith.addf %93, %92 : vector<2x16xf32>
    %95 = arith.divf %93, %94 : vector<2x16xf32>
    %96 = vector.extract_strided_slice %76 {offsets = [0, 32], sizes = [2, 16], strides = [1, 1]} : vector<2x48xf32> to vector<2x16xf32>
    %97 = vector.extract_strided_slice %79 {offsets = [0, 32], sizes = [2, 16], strides = [1, 1]} : vector<2x48xf32> to vector<2x16xf32>
    %98 = arith.mulf %87, %97 : vector<2x16xf32>
    %99 = arith.addf %96, %98 : vector<2x16xf32>
    %100 = math.tanh %99 : vector<2x16xf32>
    %cst_27 = arith.constant 1.000000e+00 : f32
    %101 = vector.broadcast %cst_27 : f32 to vector<2x16xf32>
    %102 = arith.subf %101, %95 : vector<2x16xf32>
    %103 = arith.mulf %102, %100 : vector<2x16xf32>
    %104 = arith.mulf %95, %75 : vector<2x16xf32>
    %105 = arith.addf %103, %104 : vector<2x16xf32>
    %106 = vector.extract_strided_slice %12 {offsets = [6, 0], sizes = [2, 48], strides = [1, 1]} : vector<16x48xf32> to vector<2x48xf32>
    %cst_28 = arith.constant dense<0.000000e+00> : vector<2x48xf32>
    %107 = tpu.matmul %105, %13, %cst_28 {dimension_numbers = #tpu.dot_dimension_numbers<[1], [0], [0], [1], [0, 0, 1, 1], [], []>} : vector<2x16xf32>, vector<16x48xf32>, vector<2x48xf32> -> vector<2x48xf32>
    %108 = vector.broadcast %14 : vector<1x48xf32> to vector<2x48xf32>
    %109 = arith.addf %107, %108 : vector<2x48xf32>
    %110 = vector.extract_strided_slice %106 {offsets = [0, 0], sizes = [2, 16], strides = [1, 1]} : vector<2x48xf32> to vector<2x16xf32>
    %111 = vector.extract_strided_slice %109 {offsets = [0, 0], sizes = [2, 16], strides = [1, 1]} : vector<2x48xf32> to vector<2x16xf32>
    %112 = arith.addf %110, %111 : vector<2x16xf32>
    %113 = arith.negf %112 : vector<2x16xf32>
    %114 = math.exp %113 : vector<2x16xf32>
    %cst_29 = arith.constant 1.000000e+00 : f32
    %115 = vector.broadcast %cst_29 : f32 to vector<2x16xf32>
    %116 = arith.addf %115, %114 : vector<2x16xf32>
    %117 = arith.divf %115, %116 : vector<2x16xf32>
    %118 = vector.extract_strided_slice %106 {offsets = [0, 16], sizes = [2, 16], strides = [1, 1]} : vector<2x48xf32> to vector<2x16xf32>
    %119 = vector.extract_strided_slice %109 {offsets = [0, 16], sizes = [2, 16], strides = [1, 1]} : vector<2x48xf32> to vector<2x16xf32>
    %120 = arith.addf %118, %119 : vector<2x16xf32>
    %121 = arith.negf %120 : vector<2x16xf32>
    %122 = math.exp %121 : vector<2x16xf32>
    %cst_30 = arith.constant 1.000000e+00 : f32
    %123 = vector.broadcast %cst_30 : f32 to vector<2x16xf32>
    %124 = arith.addf %123, %122 : vector<2x16xf32>
    %125 = arith.divf %123, %124 : vector<2x16xf32>
    %126 = vector.extract_strided_slice %106 {offsets = [0, 32], sizes = [2, 16], strides = [1, 1]} : vector<2x48xf32> to vector<2x16xf32>
    %127 = vector.extract_strided_slice %109 {offsets = [0, 32], sizes = [2, 16], strides = [1, 1]} : vector<2x48xf32> to vector<2x16xf32>
    %128 = arith.mulf %117, %127 : vector<2x16xf32>
    %129 = arith.addf %126, %128 : vector<2x16xf32>
    %130 = math.tanh %129 : vector<2x16xf32>
    %cst_31 = arith.constant 1.000000e+00 : f32
    %131 = vector.broadcast %cst_31 : f32 to vector<2x16xf32>
    %132 = arith.subf %131, %125 : vector<2x16xf32>
    %133 = arith.mulf %132, %130 : vector<2x16xf32>
    %134 = arith.mulf %125, %105 : vector<2x16xf32>
    %135 = arith.addf %133, %134 : vector<2x16xf32>
    %136 = vector.extract_strided_slice %12 {offsets = [8, 0], sizes = [2, 48], strides = [1, 1]} : vector<16x48xf32> to vector<2x48xf32>
    %cst_32 = arith.constant dense<0.000000e+00> : vector<2x48xf32>
    %137 = tpu.matmul %135, %13, %cst_32 {dimension_numbers = #tpu.dot_dimension_numbers<[1], [0], [0], [1], [0, 0, 1, 1], [], []>} : vector<2x16xf32>, vector<16x48xf32>, vector<2x48xf32> -> vector<2x48xf32>
    %138 = vector.broadcast %14 : vector<1x48xf32> to vector<2x48xf32>
    %139 = arith.addf %137, %138 : vector<2x48xf32>
    %140 = vector.extract_strided_slice %136 {offsets = [0, 0], sizes = [2, 16], strides = [1, 1]} : vector<2x48xf32> to vector<2x16xf32>
    %141 = vector.extract_strided_slice %139 {offsets = [0, 0], sizes = [2, 16], strides = [1, 1]} : vector<2x48xf32> to vector<2x16xf32>
    %142 = arith.addf %140, %141 : vector<2x16xf32>
    %143 = arith.negf %142 : vector<2x16xf32>
    %144 = math.exp %143 : vector<2x16xf32>
    %cst_33 = arith.constant 1.000000e+00 : f32
    %145 = vector.broadcast %cst_33 : f32 to vector<2x16xf32>
    %146 = arith.addf %145, %144 : vector<2x16xf32>
    %147 = arith.divf %145, %146 : vector<2x16xf32>
    %148 = vector.extract_strided_slice %136 {offsets = [0, 16], sizes = [2, 16], strides = [1, 1]} : vector<2x48xf32> to vector<2x16xf32>
    %149 = vector.extract_strided_slice %139 {offsets = [0, 16], sizes = [2, 16], strides = [1, 1]} : vector<2x48xf32> to vector<2x16xf32>
    %150 = arith.addf %148, %149 : vector<2x16xf32>
    %151 = arith.negf %150 : vector<2x16xf32>
    %152 = math.exp %151 : vector<2x16xf32>
    %cst_34 = arith.constant 1.000000e+00 : f32
    %153 = vector.broadcast %cst_34 : f32 to vector<2x16xf32>
    %154 = arith.addf %153, %152 : vector<2x16xf32>
    %155 = arith.divf %153, %154 : vector<2x16xf32>
    %156 = vector.extract_strided_slice %136 {offsets = [0, 32], sizes = [2, 16], strides = [1, 1]} : vector<2x48xf32> to vector<2x16xf32>
    %157 = vector.extract_strided_slice %139 {offsets = [0, 32], sizes = [2, 16], strides = [1, 1]} : vector<2x48xf32> to vector<2x16xf32>
    %158 = arith.mulf %147, %157 : vector<2x16xf32>
    %159 = arith.addf %156, %158 : vector<2x16xf32>
    %160 = math.tanh %159 : vector<2x16xf32>
    %cst_35 = arith.constant 1.000000e+00 : f32
    %161 = vector.broadcast %cst_35 : f32 to vector<2x16xf32>
    %162 = arith.subf %161, %155 : vector<2x16xf32>
    %163 = arith.mulf %162, %160 : vector<2x16xf32>
    %164 = arith.mulf %155, %135 : vector<2x16xf32>
    %165 = arith.addf %163, %164 : vector<2x16xf32>
    %166 = vector.extract_strided_slice %12 {offsets = [10, 0], sizes = [2, 48], strides = [1, 1]} : vector<16x48xf32> to vector<2x48xf32>
    %cst_36 = arith.constant dense<0.000000e+00> : vector<2x48xf32>
    %167 = tpu.matmul %165, %13, %cst_36 {dimension_numbers = #tpu.dot_dimension_numbers<[1], [0], [0], [1], [0, 0, 1, 1], [], []>} : vector<2x16xf32>, vector<16x48xf32>, vector<2x48xf32> -> vector<2x48xf32>
    %168 = vector.broadcast %14 : vector<1x48xf32> to vector<2x48xf32>
    %169 = arith.addf %167, %168 : vector<2x48xf32>
    %170 = vector.extract_strided_slice %166 {offsets = [0, 0], sizes = [2, 16], strides = [1, 1]} : vector<2x48xf32> to vector<2x16xf32>
    %171 = vector.extract_strided_slice %169 {offsets = [0, 0], sizes = [2, 16], strides = [1, 1]} : vector<2x48xf32> to vector<2x16xf32>
    %172 = arith.addf %170, %171 : vector<2x16xf32>
    %173 = arith.negf %172 : vector<2x16xf32>
    %174 = math.exp %173 : vector<2x16xf32>
    %cst_37 = arith.constant 1.000000e+00 : f32
    %175 = vector.broadcast %cst_37 : f32 to vector<2x16xf32>
    %176 = arith.addf %175, %174 : vector<2x16xf32>
    %177 = arith.divf %175, %176 : vector<2x16xf32>
    %178 = vector.extract_strided_slice %166 {offsets = [0, 16], sizes = [2, 16], strides = [1, 1]} : vector<2x48xf32> to vector<2x16xf32>
    %179 = vector.extract_strided_slice %169 {offsets = [0, 16], sizes = [2, 16], strides = [1, 1]} : vector<2x48xf32> to vector<2x16xf32>
    %180 = arith.addf %178, %179 : vector<2x16xf32>
    %181 = arith.negf %180 : vector<2x16xf32>
    %182 = math.exp %181 : vector<2x16xf32>
    %cst_38 = arith.constant 1.000000e+00 : f32
    %183 = vector.broadcast %cst_38 : f32 to vector<2x16xf32>
    %184 = arith.addf %183, %182 : vector<2x16xf32>
    %185 = arith.divf %183, %184 : vector<2x16xf32>
    %186 = vector.extract_strided_slice %166 {offsets = [0, 32], sizes = [2, 16], strides = [1, 1]} : vector<2x48xf32> to vector<2x16xf32>
    %187 = vector.extract_strided_slice %169 {offsets = [0, 32], sizes = [2, 16], strides = [1, 1]} : vector<2x48xf32> to vector<2x16xf32>
    %188 = arith.mulf %177, %187 : vector<2x16xf32>
    %189 = arith.addf %186, %188 : vector<2x16xf32>
    %190 = math.tanh %189 : vector<2x16xf32>
    %cst_39 = arith.constant 1.000000e+00 : f32
    %191 = vector.broadcast %cst_39 : f32 to vector<2x16xf32>
    %192 = arith.subf %191, %185 : vector<2x16xf32>
    %193 = arith.mulf %192, %190 : vector<2x16xf32>
    %194 = arith.mulf %185, %165 : vector<2x16xf32>
    %195 = arith.addf %193, %194 : vector<2x16xf32>
    %196 = vector.extract_strided_slice %12 {offsets = [12, 0], sizes = [2, 48], strides = [1, 1]} : vector<16x48xf32> to vector<2x48xf32>
    %cst_40 = arith.constant dense<0.000000e+00> : vector<2x48xf32>
    %197 = tpu.matmul %195, %13, %cst_40 {dimension_numbers = #tpu.dot_dimension_numbers<[1], [0], [0], [1], [0, 0, 1, 1], [], []>} : vector<2x16xf32>, vector<16x48xf32>, vector<2x48xf32> -> vector<2x48xf32>
    %198 = vector.broadcast %14 : vector<1x48xf32> to vector<2x48xf32>
    %199 = arith.addf %197, %198 : vector<2x48xf32>
    %200 = vector.extract_strided_slice %196 {offsets = [0, 0], sizes = [2, 16], strides = [1, 1]} : vector<2x48xf32> to vector<2x16xf32>
    %201 = vector.extract_strided_slice %199 {offsets = [0, 0], sizes = [2, 16], strides = [1, 1]} : vector<2x48xf32> to vector<2x16xf32>
    %202 = arith.addf %200, %201 : vector<2x16xf32>
    %203 = arith.negf %202 : vector<2x16xf32>
    %204 = math.exp %203 : vector<2x16xf32>
    %cst_41 = arith.constant 1.000000e+00 : f32
    %205 = vector.broadcast %cst_41 : f32 to vector<2x16xf32>
    %206 = arith.addf %205, %204 : vector<2x16xf32>
    %207 = arith.divf %205, %206 : vector<2x16xf32>
    %208 = vector.extract_strided_slice %196 {offsets = [0, 16], sizes = [2, 16], strides = [1, 1]} : vector<2x48xf32> to vector<2x16xf32>
    %209 = vector.extract_strided_slice %199 {offsets = [0, 16], sizes = [2, 16], strides = [1, 1]} : vector<2x48xf32> to vector<2x16xf32>
    %210 = arith.addf %208, %209 : vector<2x16xf32>
    %211 = arith.negf %210 : vector<2x16xf32>
    %212 = math.exp %211 : vector<2x16xf32>
    %cst_42 = arith.constant 1.000000e+00 : f32
    %213 = vector.broadcast %cst_42 : f32 to vector<2x16xf32>
    %214 = arith.addf %213, %212 : vector<2x16xf32>
    %215 = arith.divf %213, %214 : vector<2x16xf32>
    %216 = vector.extract_strided_slice %196 {offsets = [0, 32], sizes = [2, 16], strides = [1, 1]} : vector<2x48xf32> to vector<2x16xf32>
    %217 = vector.extract_strided_slice %199 {offsets = [0, 32], sizes = [2, 16], strides = [1, 1]} : vector<2x48xf32> to vector<2x16xf32>
    %218 = arith.mulf %207, %217 : vector<2x16xf32>
    %219 = arith.addf %216, %218 : vector<2x16xf32>
    %220 = math.tanh %219 : vector<2x16xf32>
    %cst_43 = arith.constant 1.000000e+00 : f32
    %221 = vector.broadcast %cst_43 : f32 to vector<2x16xf32>
    %222 = arith.subf %221, %215 : vector<2x16xf32>
    %223 = arith.mulf %222, %220 : vector<2x16xf32>
    %224 = arith.mulf %215, %195 : vector<2x16xf32>
    %225 = arith.addf %223, %224 : vector<2x16xf32>
    %226 = vector.extract_strided_slice %12 {offsets = [14, 0], sizes = [2, 48], strides = [1, 1]} : vector<16x48xf32> to vector<2x48xf32>
    %cst_44 = arith.constant dense<0.000000e+00> : vector<2x48xf32>
    %227 = tpu.matmul %225, %13, %cst_44 {dimension_numbers = #tpu.dot_dimension_numbers<[1], [0], [0], [1], [0, 0, 1, 1], [], []>} : vector<2x16xf32>, vector<16x48xf32>, vector<2x48xf32> -> vector<2x48xf32>
    %228 = vector.broadcast %14 : vector<1x48xf32> to vector<2x48xf32>
    %229 = arith.addf %227, %228 : vector<2x48xf32>
    %230 = vector.extract_strided_slice %226 {offsets = [0, 0], sizes = [2, 16], strides = [1, 1]} : vector<2x48xf32> to vector<2x16xf32>
    %231 = vector.extract_strided_slice %229 {offsets = [0, 0], sizes = [2, 16], strides = [1, 1]} : vector<2x48xf32> to vector<2x16xf32>
    %232 = arith.addf %230, %231 : vector<2x16xf32>
    %233 = arith.negf %232 : vector<2x16xf32>
    %234 = math.exp %233 : vector<2x16xf32>
    %cst_45 = arith.constant 1.000000e+00 : f32
    %235 = vector.broadcast %cst_45 : f32 to vector<2x16xf32>
    %236 = arith.addf %235, %234 : vector<2x16xf32>
    %237 = arith.divf %235, %236 : vector<2x16xf32>
    %238 = vector.extract_strided_slice %226 {offsets = [0, 16], sizes = [2, 16], strides = [1, 1]} : vector<2x48xf32> to vector<2x16xf32>
    %239 = vector.extract_strided_slice %229 {offsets = [0, 16], sizes = [2, 16], strides = [1, 1]} : vector<2x48xf32> to vector<2x16xf32>
    %240 = arith.addf %238, %239 : vector<2x16xf32>
    %241 = arith.negf %240 : vector<2x16xf32>
    %242 = math.exp %241 : vector<2x16xf32>
    %cst_46 = arith.constant 1.000000e+00 : f32
    %243 = vector.broadcast %cst_46 : f32 to vector<2x16xf32>
    %244 = arith.addf %243, %242 : vector<2x16xf32>
    %245 = arith.divf %243, %244 : vector<2x16xf32>
    %246 = vector.extract_strided_slice %226 {offsets = [0, 32], sizes = [2, 16], strides = [1, 1]} : vector<2x48xf32> to vector<2x16xf32>
    %247 = vector.extract_strided_slice %229 {offsets = [0, 32], sizes = [2, 16], strides = [1, 1]} : vector<2x48xf32> to vector<2x16xf32>
    %248 = arith.mulf %237, %247 : vector<2x16xf32>
    %249 = arith.addf %246, %248 : vector<2x16xf32>
    %250 = math.tanh %249 : vector<2x16xf32>
    %cst_47 = arith.constant 1.000000e+00 : f32
    %251 = vector.broadcast %cst_47 : f32 to vector<2x16xf32>
    %252 = arith.subf %251, %245 : vector<2x16xf32>
    %253 = arith.mulf %252, %250 : vector<2x16xf32>
    %254 = arith.mulf %245, %225 : vector<2x16xf32>
    %255 = arith.addf %253, %254 : vector<2x16xf32>
    %c0_48 = arith.constant 0 : index
    %c0_49 = arith.constant 0 : index
    %256 = vector.load %arg8[%c0_48, %c0_49] : memref<4x32xf32, #tpu.memory_space<vmem>>, vector<4x32xf32>
    %c0_50 = arith.constant 0 : index
    %c0_51 = arith.constant 0 : index
    %257 = vector.load %arg9[%c0_50, %c0_51] : memref<1x32xf32, #tpu.memory_space<vmem>>, vector<1x32xf32>
    %c0_52 = arith.constant 0 : index
    %c0_53 = arith.constant 0 : index
    %258 = vector.load %arg10[%c0_52, %c0_53] : memref<32x48xf32, #tpu.memory_space<vmem>>, vector<32x48xf32>
    %c0_54 = arith.constant 0 : index
    %c0_55 = arith.constant 0 : index
    %259 = vector.load %arg11[%c0_54, %c0_55] : memref<1x48xf32, #tpu.memory_space<vmem>>, vector<1x48xf32>
    %c0_56 = arith.constant 0 : index
    %c0_57 = arith.constant 0 : index
    %260 = vector.load %arg12[%c0_56, %c0_57] : memref<16x48xf32, #tpu.memory_space<vmem>>, vector<16x48xf32>
    %c0_58 = arith.constant 0 : index
    %c0_59 = arith.constant 0 : index
    %261 = vector.load %arg13[%c0_58, %c0_59] : memref<1x48xf32, #tpu.memory_space<vmem>>, vector<1x48xf32>
    %c0_60 = arith.constant 0 : index
    %c0_61 = arith.constant 0 : index
    %262 = vector.load %arg14[%c0_60, %c0_61] : memref<16x4xf32, #tpu.memory_space<vmem>>, vector<16x4xf32>
    %c0_62 = arith.constant 0 : index
    %c0_63 = arith.constant 0 : index
    %263 = vector.load %arg15[%c0_62, %c0_63] : memref<1x4xf32, #tpu.memory_space<vmem>>, vector<1x4xf32>
    %c0_64 = arith.constant 0 : index
    %c0_65 = arith.constant 0 : index
    %264 = vector.load %arg7[%c0_64, %c0_65] : memref<2x4xf32, #tpu.memory_space<vmem>>, vector<2x4xf32>
    %cst_66 = arith.constant dense<0.000000e+00> : vector<2x32xf32>
    %265 = tpu.matmul %264, %256, %cst_66 {dimension_numbers = #tpu.dot_dimension_numbers<[1], [0], [0], [1], [0, 0, 1, 1], [], []>} : vector<2x4xf32>, vector<4x32xf32>, vector<2x32xf32> -> vector<2x32xf32>
    %266 = vector.broadcast %257 : vector<1x32xf32> to vector<2x32xf32>
    %267 = arith.addf %265, %266 : vector<2x32xf32>
    %cst_67 = arith.constant 0.000000e+00 : f32
    %268 = vector.broadcast %cst_67 : f32 to vector<2x32xf32>
    %269 = arith.maximumf %267, %268 : vector<2x32xf32>
    %cst_68 = arith.constant dense<0.000000e+00> : vector<2x48xf32>
    %270 = tpu.matmul %269, %258, %cst_68 {dimension_numbers = #tpu.dot_dimension_numbers<[1], [0], [0], [1], [0, 0, 1, 1], [], []>} : vector<2x32xf32>, vector<32x48xf32>, vector<2x48xf32> -> vector<2x48xf32>
    %271 = vector.broadcast %259 : vector<1x48xf32> to vector<2x48xf32>
    %272 = arith.addf %270, %271 : vector<2x48xf32>
    %cst_69 = arith.constant dense<0.000000e+00> : vector<2x48xf32>
    %273 = tpu.matmul %255, %260, %cst_69 {dimension_numbers = #tpu.dot_dimension_numbers<[1], [0], [0], [1], [0, 0, 1, 1], [], []>} : vector<2x16xf32>, vector<16x48xf32>, vector<2x48xf32> -> vector<2x48xf32>
    %274 = vector.broadcast %261 : vector<1x48xf32> to vector<2x48xf32>
    %275 = arith.addf %273, %274 : vector<2x48xf32>
    %276 = vector.extract_strided_slice %272 {offsets = [0, 0], sizes = [2, 16], strides = [1, 1]} : vector<2x48xf32> to vector<2x16xf32>
    %277 = vector.extract_strided_slice %275 {offsets = [0, 0], sizes = [2, 16], strides = [1, 1]} : vector<2x48xf32> to vector<2x16xf32>
    %278 = arith.addf %276, %277 : vector<2x16xf32>
    %279 = arith.negf %278 : vector<2x16xf32>
    %280 = math.exp %279 : vector<2x16xf32>
    %cst_70 = arith.constant 1.000000e+00 : f32
    %281 = vector.broadcast %cst_70 : f32 to vector<2x16xf32>
    %282 = arith.addf %281, %280 : vector<2x16xf32>
    %283 = arith.divf %281, %282 : vector<2x16xf32>
    %284 = vector.extract_strided_slice %272 {offsets = [0, 16], sizes = [2, 16], strides = [1, 1]} : vector<2x48xf32> to vector<2x16xf32>
    %285 = vector.extract_strided_slice %275 {offsets = [0, 16], sizes = [2, 16], strides = [1, 1]} : vector<2x48xf32> to vector<2x16xf32>
    %286 = arith.addf %284, %285 : vector<2x16xf32>
    %287 = arith.negf %286 : vector<2x16xf32>
    %288 = math.exp %287 : vector<2x16xf32>
    %cst_71 = arith.constant 1.000000e+00 : f32
    %289 = vector.broadcast %cst_71 : f32 to vector<2x16xf32>
    %290 = arith.addf %289, %288 : vector<2x16xf32>
    %291 = arith.divf %289, %290 : vector<2x16xf32>
    %292 = vector.extract_strided_slice %272 {offsets = [0, 32], sizes = [2, 16], strides = [1, 1]} : vector<2x48xf32> to vector<2x16xf32>
    %293 = vector.extract_strided_slice %275 {offsets = [0, 32], sizes = [2, 16], strides = [1, 1]} : vector<2x48xf32> to vector<2x16xf32>
    %294 = arith.mulf %283, %293 : vector<2x16xf32>
    %295 = arith.addf %292, %294 : vector<2x16xf32>
    %296 = math.tanh %295 : vector<2x16xf32>
    %cst_72 = arith.constant 1.000000e+00 : f32
    %297 = vector.broadcast %cst_72 : f32 to vector<2x16xf32>
    %298 = arith.subf %297, %291 : vector<2x16xf32>
    %299 = arith.mulf %298, %296 : vector<2x16xf32>
    %300 = arith.mulf %291, %255 : vector<2x16xf32>
    %301 = arith.addf %299, %300 : vector<2x16xf32>
    %cst_73 = arith.constant dense<0.000000e+00> : vector<2x4xf32>
    %302 = tpu.matmul %301, %262, %cst_73 {dimension_numbers = #tpu.dot_dimension_numbers<[1], [0], [0], [1], [0, 0, 1, 1], [], []>} : vector<2x16xf32>, vector<16x4xf32>, vector<2x4xf32> -> vector<2x4xf32>
    %303 = vector.broadcast %263 : vector<1x4xf32> to vector<2x4xf32>
    %304 = arith.addf %302, %303 : vector<2x4xf32>
    %c0_74 = arith.constant 0 : index
    %c0_75 = arith.constant 0 : index
    %c0_76 = arith.constant 0 : index
    %305 = vector.load %arg16[%c0_74, %c0_75, %c0_76] : memref<4x2x4xf32, #tpu.memory_space<vmem>>, vector<1x2x4xf32>
    %306 = vector.shape_cast %305 : vector<1x2x4xf32> to vector<2x4xf32>
    %307 = vector.shape_cast %304 : vector<2x4xf32> to vector<1x2x4xf32>
    tpu.vector_store %arg16[%c0_74, %c0_75, %c0_76], %307 {strides = array<i32>} : memref<4x2x4xf32, #tpu.memory_space<vmem>>, vector<1x2x4xf32>,
    %cst_77 = arith.constant dense<0.000000e+00> : vector<2x32xf32>
    %308 = tpu.matmul %304, %256, %cst_77 {dimension_numbers = #tpu.dot_dimension_numbers<[1], [0], [0], [1], [0, 0, 1, 1], [], []>} : vector<2x4xf32>, vector<4x32xf32>, vector<2x32xf32> -> vector<2x32xf32>
    %309 = vector.broadcast %257 : vector<1x32xf32> to vector<2x32xf32>
    %310 = arith.addf %308, %309 : vector<2x32xf32>
    %cst_78 = arith.constant 0.000000e+00 : f32
    %311 = vector.broadcast %cst_78 : f32 to vector<2x32xf32>
    %312 = arith.maximumf %310, %311 : vector<2x32xf32>
    %cst_79 = arith.constant dense<0.000000e+00> : vector<2x48xf32>
    %313 = tpu.matmul %312, %258, %cst_79 {dimension_numbers = #tpu.dot_dimension_numbers<[1], [0], [0], [1], [0, 0, 1, 1], [], []>} : vector<2x32xf32>, vector<32x48xf32>, vector<2x48xf32> -> vector<2x48xf32>
    %314 = vector.broadcast %259 : vector<1x48xf32> to vector<2x48xf32>
    %315 = arith.addf %313, %314 : vector<2x48xf32>
    %cst_80 = arith.constant dense<0.000000e+00> : vector<2x48xf32>
    %316 = tpu.matmul %301, %260, %cst_80 {dimension_numbers = #tpu.dot_dimension_numbers<[1], [0], [0], [1], [0, 0, 1, 1], [], []>} : vector<2x16xf32>, vector<16x48xf32>, vector<2x48xf32> -> vector<2x48xf32>
    %317 = vector.broadcast %261 : vector<1x48xf32> to vector<2x48xf32>
    %318 = arith.addf %316, %317 : vector<2x48xf32>
    %319 = vector.extract_strided_slice %315 {offsets = [0, 0], sizes = [2, 16], strides = [1, 1]} : vector<2x48xf32> to vector<2x16xf32>
    %320 = vector.extract_strided_slice %318 {offsets = [0, 0], sizes = [2, 16], strides = [1, 1]} : vector<2x48xf32> to vector<2x16xf32>
    %321 = arith.addf %319, %320 : vector<2x16xf32>
    %322 = arith.negf %321 : vector<2x16xf32>
    %323 = math.exp %322 : vector<2x16xf32>
    %cst_81 = arith.constant 1.000000e+00 : f32
    %324 = vector.broadcast %cst_81 : f32 to vector<2x16xf32>
    %325 = arith.addf %324, %323 : vector<2x16xf32>
    %326 = arith.divf %324, %325 : vector<2x16xf32>
    %327 = vector.extract_strided_slice %315 {offsets = [0, 16], sizes = [2, 16], strides = [1, 1]} : vector<2x48xf32> to vector<2x16xf32>
    %328 = vector.extract_strided_slice %318 {offsets = [0, 16], sizes = [2, 16], strides = [1, 1]} : vector<2x48xf32> to vector<2x16xf32>
    %329 = arith.addf %327, %328 : vector<2x16xf32>
    %330 = arith.negf %329 : vector<2x16xf32>
    %331 = math.exp %330 : vector<2x16xf32>
    %cst_82 = arith.constant 1.000000e+00 : f32
    %332 = vector.broadcast %cst_82 : f32 to vector<2x16xf32>
    %333 = arith.addf %332, %331 : vector<2x16xf32>
    %334 = arith.divf %332, %333 : vector<2x16xf32>
    %335 = vector.extract_strided_slice %315 {offsets = [0, 32], sizes = [2, 16], strides = [1, 1]} : vector<2x48xf32> to vector<2x16xf32>
    %336 = vector.extract_strided_slice %318 {offsets = [0, 32], sizes = [2, 16], strides = [1, 1]} : vector<2x48xf32> to vector<2x16xf32>
    %337 = arith.mulf %326, %336 : vector<2x16xf32>
    %338 = arith.addf %335, %337 : vector<2x16xf32>
    %339 = math.tanh %338 : vector<2x16xf32>
    %cst_83 = arith.constant 1.000000e+00 : f32
    %340 = vector.broadcast %cst_83 : f32 to vector<2x16xf32>
    %341 = arith.subf %340, %334 : vector<2x16xf32>
    %342 = arith.mulf %341, %339 : vector<2x16xf32>
    %343 = arith.mulf %334, %301 : vector<2x16xf32>
    %344 = arith.addf %342, %343 : vector<2x16xf32>
    %cst_84 = arith.constant dense<0.000000e+00> : vector<2x4xf32>
    %345 = tpu.matmul %344, %262, %cst_84 {dimension_numbers = #tpu.dot_dimension_numbers<[1], [0], [0], [1], [0, 0, 1, 1], [], []>} : vector<2x16xf32>, vector<16x4xf32>, vector<2x4xf32> -> vector<2x4xf32>
    %346 = vector.broadcast %263 : vector<1x4xf32> to vector<2x4xf32>
    %347 = arith.addf %345, %346 : vector<2x4xf32>
    %c1 = arith.constant 1 : index
    %c0_85 = arith.constant 0 : index
    %c0_86 = arith.constant 0 : index
    %348 = vector.load %arg16[%c1, %c0_85, %c0_86] : memref<4x2x4xf32, #tpu.memory_space<vmem>>, vector<1x2x4xf32>
    %349 = vector.shape_cast %348 : vector<1x2x4xf32> to vector<2x4xf32>
    %350 = vector.shape_cast %347 : vector<2x4xf32> to vector<1x2x4xf32>
    tpu.vector_store %arg16[%c1, %c0_85, %c0_86], %350 {strides = array<i32>} : memref<4x2x4xf32, #tpu.memory_space<vmem>>, vector<1x2x4xf32>,
    %cst_87 = arith.constant dense<0.000000e+00> : vector<2x32xf32>
    %351 = tpu.matmul %347, %256, %cst_87 {dimension_numbers = #tpu.dot_dimension_numbers<[1], [0], [0], [1], [0, 0, 1, 1], [], []>} : vector<2x4xf32>, vector<4x32xf32>, vector<2x32xf32> -> vector<2x32xf32>
    %352 = vector.broadcast %257 : vector<1x32xf32> to vector<2x32xf32>
    %353 = arith.addf %351, %352 : vector<2x32xf32>
    %cst_88 = arith.constant 0.000000e+00 : f32
    %354 = vector.broadcast %cst_88 : f32 to vector<2x32xf32>
    %355 = arith.maximumf %353, %354 : vector<2x32xf32>
    %cst_89 = arith.constant dense<0.000000e+00> : vector<2x48xf32>
    %356 = tpu.matmul %355, %258, %cst_89 {dimension_numbers = #tpu.dot_dimension_numbers<[1], [0], [0], [1], [0, 0, 1, 1], [], []>} : vector<2x32xf32>, vector<32x48xf32>, vector<2x48xf32> -> vector<2x48xf32>
    %357 = vector.broadcast %259 : vector<1x48xf32> to vector<2x48xf32>
    %358 = arith.addf %356, %357 : vector<2x48xf32>
    %cst_90 = arith.constant dense<0.000000e+00> : vector<2x48xf32>
    %359 = tpu.matmul %344, %260, %cst_90 {dimension_numbers = #tpu.dot_dimension_numbers<[1], [0], [0], [1], [0, 0, 1, 1], [], []>} : vector<2x16xf32>, vector<16x48xf32>, vector<2x48xf32> -> vector<2x48xf32>
    %360 = vector.broadcast %261 : vector<1x48xf32> to vector<2x48xf32>
    %361 = arith.addf %359, %360 : vector<2x48xf32>
    %362 = vector.extract_strided_slice %358 {offsets = [0, 0], sizes = [2, 16], strides = [1, 1]} : vector<2x48xf32> to vector<2x16xf32>
    %363 = vector.extract_strided_slice %361 {offsets = [0, 0], sizes = [2, 16], strides = [1, 1]} : vector<2x48xf32> to vector<2x16xf32>
    %364 = arith.addf %362, %363 : vector<2x16xf32>
    %365 = arith.negf %364 : vector<2x16xf32>
    %366 = math.exp %365 : vector<2x16xf32>
    %cst_91 = arith.constant 1.000000e+00 : f32
    %367 = vector.broadcast %cst_91 : f32 to vector<2x16xf32>
    %368 = arith.addf %367, %366 : vector<2x16xf32>
    %369 = arith.divf %367, %368 : vector<2x16xf32>
    %370 = vector.extract_strided_slice %358 {offsets = [0, 16], sizes = [2, 16], strides = [1, 1]} : vector<2x48xf32> to vector<2x16xf32>
    %371 = vector.extract_strided_slice %361 {offsets = [0, 16], sizes = [2, 16], strides = [1, 1]} : vector<2x48xf32> to vector<2x16xf32>
    %372 = arith.addf %370, %371 : vector<2x16xf32>
    %373 = arith.negf %372 : vector<2x16xf32>
    %374 = math.exp %373 : vector<2x16xf32>
    %cst_92 = arith.constant 1.000000e+00 : f32
    %375 = vector.broadcast %cst_92 : f32 to vector<2x16xf32>
    %376 = arith.addf %375, %374 : vector<2x16xf32>
    %377 = arith.divf %375, %376 : vector<2x16xf32>
    %378 = vector.extract_strided_slice %358 {offsets = [0, 32], sizes = [2, 16], strides = [1, 1]} : vector<2x48xf32> to vector<2x16xf32>
    %379 = vector.extract_strided_slice %361 {offsets = [0, 32], sizes = [2, 16], strides = [1, 1]} : vector<2x48xf32> to vector<2x16xf32>
    %380 = arith.mulf %369, %379 : vector<2x16xf32>
    %381 = arith.addf %378, %380 : vector<2x16xf32>
    %382 = math.tanh %381 : vector<2x16xf32>
    %cst_93 = arith.constant 1.000000e+00 : f32
    %383 = vector.broadcast %cst_93 : f32 to vector<2x16xf32>
    %384 = arith.subf %383, %377 : vector<2x16xf32>
    %385 = arith.mulf %384, %382 : vector<2x16xf32>
    %386 = arith.mulf %377, %344 : vector<2x16xf32>
    %387 = arith.addf %385, %386 : vector<2x16xf32>
    %cst_94 = arith.constant dense<0.000000e+00> : vector<2x4xf32>
    %388 = tpu.matmul %387, %262, %cst_94 {dimension_numbers = #tpu.dot_dimension_numbers<[1], [0], [0], [1], [0, 0, 1, 1], [], []>} : vector<2x16xf32>, vector<16x4xf32>, vector<2x4xf32> -> vector<2x4xf32>
    %389 = vector.broadcast %263 : vector<1x4xf32> to vector<2x4xf32>
    %390 = arith.addf %388, %389 : vector<2x4xf32>
    %c2 = arith.constant 2 : index
    %c0_95 = arith.constant 0 : index
    %c0_96 = arith.constant 0 : index
    %391 = vector.load %arg16[%c2, %c0_95, %c0_96] : memref<4x2x4xf32, #tpu.memory_space<vmem>>, vector<1x2x4xf32>
    %392 = vector.shape_cast %391 : vector<1x2x4xf32> to vector<2x4xf32>
    %393 = vector.shape_cast %390 : vector<2x4xf32> to vector<1x2x4xf32>
    tpu.vector_store %arg16[%c2, %c0_95, %c0_96], %393 {strides = array<i32>} : memref<4x2x4xf32, #tpu.memory_space<vmem>>, vector<1x2x4xf32>,
    %cst_97 = arith.constant dense<0.000000e+00> : vector<2x32xf32>
    %394 = tpu.matmul %390, %256, %cst_97 {dimension_numbers = #tpu.dot_dimension_numbers<[1], [0], [0], [1], [0, 0, 1, 1], [], []>} : vector<2x4xf32>, vector<4x32xf32>, vector<2x32xf32> -> vector<2x32xf32>
    %395 = vector.broadcast %257 : vector<1x32xf32> to vector<2x32xf32>
    %396 = arith.addf %394, %395 : vector<2x32xf32>
    %cst_98 = arith.constant 0.000000e+00 : f32
    %397 = vector.broadcast %cst_98 : f32 to vector<2x32xf32>
    %398 = arith.maximumf %396, %397 : vector<2x32xf32>
    %cst_99 = arith.constant dense<0.000000e+00> : vector<2x48xf32>
    %399 = tpu.matmul %398, %258, %cst_99 {dimension_numbers = #tpu.dot_dimension_numbers<[1], [0], [0], [1], [0, 0, 1, 1], [], []>} : vector<2x32xf32>, vector<32x48xf32>, vector<2x48xf32> -> vector<2x48xf32>
    %400 = vector.broadcast %259 : vector<1x48xf32> to vector<2x48xf32>
    %401 = arith.addf %399, %400 : vector<2x48xf32>
    %cst_100 = arith.constant dense<0.000000e+00> : vector<2x48xf32>
    %402 = tpu.matmul %387, %260, %cst_100 {dimension_numbers = #tpu.dot_dimension_numbers<[1], [0], [0], [1], [0, 0, 1, 1], [], []>} : vector<2x16xf32>, vector<16x48xf32>, vector<2x48xf32> -> vector<2x48xf32>
    %403 = vector.broadcast %261 : vector<1x48xf32> to vector<2x48xf32>
    %404 = arith.addf %402, %403 : vector<2x48xf32>
    %405 = vector.extract_strided_slice %401 {offsets = [0, 0], sizes = [2, 16], strides = [1, 1]} : vector<2x48xf32> to vector<2x16xf32>
    %406 = vector.extract_strided_slice %404 {offsets = [0, 0], sizes = [2, 16], strides = [1, 1]} : vector<2x48xf32> to vector<2x16xf32>
    %407 = arith.addf %405, %406 : vector<2x16xf32>
    %408 = arith.negf %407 : vector<2x16xf32>
    %409 = math.exp %408 : vector<2x16xf32>
    %cst_101 = arith.constant 1.000000e+00 : f32
    %410 = vector.broadcast %cst_101 : f32 to vector<2x16xf32>
    %411 = arith.addf %410, %409 : vector<2x16xf32>
    %412 = arith.divf %410, %411 : vector<2x16xf32>
    %413 = vector.extract_strided_slice %401 {offsets = [0, 16], sizes = [2, 16], strides = [1, 1]} : vector<2x48xf32> to vector<2x16xf32>
    %414 = vector.extract_strided_slice %404 {offsets = [0, 16], sizes = [2, 16], strides = [1, 1]} : vector<2x48xf32> to vector<2x16xf32>
    %415 = arith.addf %413, %414 : vector<2x16xf32>
    %416 = arith.negf %415 : vector<2x16xf32>
    %417 = math.exp %416 : vector<2x16xf32>
    %cst_102 = arith.constant 1.000000e+00 : f32
    %418 = vector.broadcast %cst_102 : f32 to vector<2x16xf32>
    %419 = arith.addf %418, %417 : vector<2x16xf32>
    %420 = arith.divf %418, %419 : vector<2x16xf32>
    %421 = vector.extract_strided_slice %401 {offsets = [0, 32], sizes = [2, 16], strides = [1, 1]} : vector<2x48xf32> to vector<2x16xf32>
    %422 = vector.extract_strided_slice %404 {offsets = [0, 32], sizes = [2, 16], strides = [1, 1]} : vector<2x48xf32> to vector<2x16xf32>
    %423 = arith.mulf %412, %422 : vector<2x16xf32>
    %424 = arith.addf %421, %423 : vector<2x16xf32>
    %425 = math.tanh %424 : vector<2x16xf32>
    %cst_103 = arith.constant 1.000000e+00 : f32
    %426 = vector.broadcast %cst_103 : f32 to vector<2x16xf32>
    %427 = arith.subf %426, %420 : vector<2x16xf32>
    %428 = arith.mulf %427, %425 : vector<2x16xf32>
    %429 = arith.mulf %420, %387 : vector<2x16xf32>
    %430 = arith.addf %428, %429 : vector<2x16xf32>
    %cst_104 = arith.constant dense<0.000000e+00> : vector<2x4xf32>
    %431 = tpu.matmul %430, %262, %cst_104 {dimension_numbers = #tpu.dot_dimension_numbers<[1], [0], [0], [1], [0, 0, 1, 1], [], []>} : vector<2x16xf32>, vector<16x4xf32>, vector<2x4xf32> -> vector<2x4xf32>
    %432 = vector.broadcast %263 : vector<1x4xf32> to vector<2x4xf32>
    %433 = arith.addf %431, %432 : vector<2x4xf32>
    %c3 = arith.constant 3 : index
    %c0_105 = arith.constant 0 : index
    %c0_106 = arith.constant 0 : index
    %434 = vector.load %arg16[%c3, %c0_105, %c0_106] : memref<4x2x4xf32, #tpu.memory_space<vmem>>, vector<1x2x4xf32>
    %435 = vector.shape_cast %434 : vector<1x2x4xf32> to vector<2x4xf32>
    %436 = vector.shape_cast %433 : vector<2x4xf32> to vector<1x2x4xf32>
    tpu.vector_store %arg16[%c3, %c0_105, %c0_106], %436 {strides = array<i32>} : memref<4x2x4xf32, #tpu.memory_space<vmem>>, vector<1x2x4xf32>,
    return
  }
}

</mosaic_0001>

<bundles_post_ra>
// kernel: tpu_custom_call.1
= control target key start
LH: loop header
LB: loop body
LE: loop exit
PB: predicated region body
PF: predicated region fallthrough
CT: control target
= control target key end

     0   :  { %s3878_s0 = inlined_call_operand.vmem [shape: f32[16,12], index: 0, kind: input, shape index: {}]   ;;  %s3879_s1 = inlined_call_operand.hbm [shape: f32[12,32], index: 1, kind: input, shape index: {}]   ;;  %s3880_s2 = inlined_call_operand.vmem [shape: f32[1,32], index: 2, kind: input, shape index: {}]   ;;  %s3881_s3 = inlined_call_operand.hbm [shape: f32[32,48], index: 3, kind: input, shape index: {}]   ;;  %s3882_s4 = inlined_call_operand.hbm [shape: f32[1,48], index: 4, kind: input, shape index: {}]   ;;  %s3883_s5 = inlined_call_operand.hbm [shape: f32[16,48], index: 5, kind: input, shape index: {}]   ;;  %s3884_s6 = inlined_call_operand.hbm [shape: f32[1,48], index: 6, kind: input, shape index: {}]   ;;  %s3885_s7 = inlined_call_operand.hbm [shape: f32[2,4], index: 7, kind: input, shape index: {}]   ;;  %s3886_s8 = inlined_call_operand.hbm [shape: f32[4,32], index: 8, kind: input, shape index: {}]   ;;  %s3887_s9 = inlined_call_operand.hbm [shape: f32[1,32], index: 9, kind: input, shape index: {}]   ;;  %s3888_s10 = inlined_call_operand.vmem [shape: f32[32,48], index: 10, kind: input, shape index: {}]   ;;  %s3889_s11 = inlined_call_operand.hbm [shape: f32[1,48], index: 11, kind: input, shape index: {}]   ;;  %s3890_s12 = inlined_call_operand.vmem [shape: f32[16,48], index: 12, kind: input, shape index: {}]   ;;  %s3891_s13 = inlined_call_operand.hbm [shape: f32[1,48], index: 13, kind: input, shape index: {}]   ;;  %s3892_s14 = inlined_call_operand.vmem [shape: f32[16,4], index: 14, kind: input, shape index: {}]   ;;  %s3893_s15 = inlined_call_operand.vmem [shape: f32[1,4], index: 15, kind: input, shape index: {}]   ;;  %s3894_s16 = inlined_call_operand.hbm [shape: f32[4,2,4], index: 16, kind: output, shape index: {}]  }
   0x1   :  { %3896 = sst [smem:[#allocation27_spill]] %s3878_s0 }
   0x2   :  { %21 = vsyncpa [#allocation3], 0 }
   0x3   :  { %22 = vsyncpa [#allocation6], 0 }
   0x4   :  { %23 = vsyncpa [#allocation9], 0 }
   0x5   :  { %24 = vsyncpa [#allocation12], 0 }
   0x6   :  { %25 = vsyncpa [#allocation15], 0 }
   0x7   :  { %26 = vsyncpa [#allocation18], 0 }
   0x8   :  { %27 = vsyncpa [#allocation4], 0  ;;  %s3331_s21 = smov [#allocation5]   ;;  %s3332_s23 = smov [#allocation8]  }
   0x9   :  { %s49_s22 = sshll.u32 %s3331_s21, 4  ;;  %s71_s24 = sshll.u32 %s3332_s23, 4  ;;  %s50_s22 = int_to_ptr.vmem [resolvable:$true] %s49_s22  ;;  %s3437_s24 = int_to_ptr.vmem [resolvable:$true] %s71_s24 }
   0xa   :  { %s3075_s27 = scalar_lea.hbm %s3881_s3, 512 }
   0xb   :  { %p3076_p0 = scmp.ne.s32.totalorder %s3881_s3, %s3075_s27  ;;  %p3079_p1 = scmp.lt.u32.totalorder %s3075_s27, %s3881_s3 }
   0xd   :  { %p3081_p2 = pnand %p3079_p1, %p3076_p0 }
   0xf   :  { %3084 = shalt.err (!%p3081_p2)
}
  0x10   :  { %s3085_s17 = scalar_lea.vmem %s50_s22, 512  ;;  %p3090_p4 = scmp.lt.s32.totalorder %s50_s22, %s50_s22 }
  0x11   :  { %p3086_p3 = scmp.ne.s32.totalorder %s50_s22, %s3085_s17  ;;  %p3091_p5 = scmp.lt.s32.totalorder %s3085_s17, %s3085_s17 }
  0x13   :  { %p3092_p6 = por %p3091_p5, %p3090_p4 }
  0x15   :  { %p3093_p7 = pnand %p3092_p6, %p3086_p3 }
  0x17   :  { %3096 = shalt.err (!%p3093_p7)
}
  0x18   :  { %s3333_s18 = smov 128   ;;  %s3334_s19 = smov 8  }
  0x19   :  { %55 = dma.hbm_to_vmem [thread:$0]  %s3881_s3, 512, %s50_s22, [#allocation6], %s3333_s18, %s3333_s18, %s3334_s19  }
  0x1a   :  { %s3097_s26 = scalar_lea.hbm %s3883_s5, 256 }
  0x1b   :  { %p3098_p8 = scmp.ne.s32.totalorder %s3883_s5, %s3097_s26  ;;  %p3101_p9 = scmp.lt.u32.totalorder %s3097_s26, %s3883_s5 }
  0x1d   :  { %p3103_p10 = pnand %p3101_p9, %p3098_p8 }
  0x1f   :  { %3106 = shalt.err (!%p3103_p10)
}
  0x20   :  { %s3107_s0 = scalar_lea.vmem %s3437_s24, 256  ;;  %p3112_p12 = scmp.lt.s32.totalorder %s3437_s24, %s3437_s24 }
  0x21   :  { %p3108_p11 = scmp.ne.s32.totalorder %s3437_s24, %s3107_s0  ;;  %p3113_p13 = scmp.lt.s32.totalorder %s3107_s0, %s3107_s0 }
  0x23   :  { %p3114_p0 = por %p3113_p13, %p3112_p12 }
  0x25   :  { %p3115_p1 = pnand %p3114_p0, %p3108_p11 }
  0x27   :  { %3118 = shalt.err (!%p3115_p1)
}
  0x28   :  { %77 = dma.hbm_to_vmem [thread:$0]  %s3883_s5, 256, %s3437_s24, [#allocation9], %s3333_s18, %s3333_s18, %s3334_s19  }
  0x29   :  { %s3335_s17 = smov [#allocation11]   ;;  %s3336_s21 = smov [#allocation14]  }
  0x2a   :  { %s94_s20 = sshll.u32 %s3335_s17, 4  ;;  %s114_s23 = sshll.u32 %s3336_s21, 4  ;;  %s95_s20 = int_to_ptr.vmem [resolvable:$true] %s94_s20  ;;  %s115_s23 = int_to_ptr.vmem [resolvable:$true] %s114_s23 }
  0x2b   :  { %s3119_s27 = scalar_lea.hbm %s3885_s7, 32 }
  0x2c   :  { %p3120_p2 = scmp.ne.s32.totalorder %s3885_s7, %s3119_s27  ;;  %p3123_p3 = scmp.lt.u32.totalorder %s3119_s27, %s3885_s7 }
  0x2e   :  { %p3125_p4 = pnand %p3123_p3, %p3120_p2 }
  0x30   :  { %3128 = shalt.err (!%p3125_p4)
}
  0x31   :  { %s3129_s5 = scalar_lea.vmem %s95_s20, 32  ;;  %p3134_p6 = scmp.lt.s32.totalorder %s95_s20, %s95_s20 }
  0x32   :  { %p3130_p5 = scmp.ne.s32.totalorder %s95_s20, %s3129_s5  ;;  %p3135_p7 = scmp.lt.s32.totalorder %s3129_s5, %s3129_s5 }
  0x34   :  { %p3136_p8 = por %p3135_p7, %p3134_p6 }
  0x36   :  { %p3137_p9 = pnand %p3136_p8, %p3130_p5 }
  0x38   :  { %3140 = shalt.err (!%p3137_p9)
}
  0x39   :  { %97 = dma.hbm_to_vmem [thread:$0]  %s3885_s7, 32, %s95_s20, [#allocation12]  }
  0x3a   :  { %s3141_s21 = scalar_lea.hbm %s3887_s9, 16 }
  0x3b   :  { %p3142_p10 = scmp.ne.s32.totalorder %s3887_s9, %s3141_s21  ;;  %p3145_p11 = scmp.lt.u32.totalorder %s3141_s21, %s3887_s9 }
  0x3d   :  { %p3147_p12 = pnand %p3145_p11, %p3142_p10 }
  0x3f   :  { %3150 = shalt.err (!%p3147_p12)
}
  0x40   :  { %s3151_s29 = scalar_lea.vmem %s115_s23, 16  ;;  %s3155_s30 = scalar_lea.vmem %s115_s23, 32 }
  0x41   :  { %p3152_p13 = scmp.ne.s32.totalorder %s115_s23, %s3151_s29  ;;  %p3156_p0 = scmp.lt.s32.totalorder %s115_s23, %s115_s23 }
  0x42   :  { %p3157_p1 = scmp.lt.s32.totalorder %s3155_s30, %s3151_s29 }
  0x44   :  { %p3158_p2 = por %p3157_p1, %p3156_p0 }
  0x46   :  { %p3159_p3 = pnand %p3158_p2, %p3152_p13 }
  0x48   :  { %3162 = shalt.err (!%p3159_p3)
}
  0x49   :  { %117 = dma.hbm_to_vmem [thread:$0]  %s3887_s9, 16, %s115_s23, [#allocation15]  }
  0x4a   :  { %s3337_s0 = smov [#allocation2]   ;;  %s3338_s24 = smov [#allocation7]  }
  0x4b   :  { %s35_s5 = sshll.u32 %s3337_s0, 4  ;;  %s62_s3 = sshll.u32 %s3338_s24, 4  ;;  %s36_s5 = int_to_ptr.vmem [resolvable:$true] %s35_s5  ;;  %s63_s3 = int_to_ptr.vmem [resolvable:$true] %s62_s3 }
  0x4c   :  { %s3163_s21 = scalar_lea.hbm %s3879_s1, 256 }
  0x4d   :  { %p3164_p4 = scmp.ne.s32.totalorder %s3879_s1, %s3163_s21  ;;  %p3167_p5 = scmp.lt.u32.totalorder %s3163_s21, %s3879_s1 }
  0x4f   :  { %p3169_p6 = pnand %p3167_p5, %p3164_p4 }
  0x51   :  { %3172 = shalt.err (!%p3169_p6)
}
  0x52   :  { %s3173_s9 = scalar_lea.vmem %s36_s5, 256  ;;  %p3178_p8 = scmp.lt.s32.totalorder %s36_s5, %s36_s5 }
  0x53   :  { %p3174_p7 = scmp.ne.s32.totalorder %s36_s5, %s3173_s9  ;;  %p3179_p9 = scmp.lt.s32.totalorder %s3173_s9, %s3173_s9 }
  0x55   :  { %p3180_p10 = por %p3179_p9, %p3178_p8 }
  0x57   :  { %p3181_p11 = pnand %p3180_p10, %p3174_p7 }
  0x59   :  { %3184 = shalt.err (!%p3181_p11)
}
  0x5a   :  { %41 = dma.hbm_to_vmem [thread:$0]  %s3879_s1, 256, %s36_s5, [#allocation3], %s3333_s18, %s3333_s18, %s3334_s19  }
  0x5b   :  { %s3185_s20 = scalar_lea.hbm %s3882_s4, 16 }
  0x5c   :  { %p3186_p12 = scmp.ne.s32.totalorder %s3882_s4, %s3185_s20  ;;  %p3189_p13 = scmp.lt.u32.totalorder %s3185_s20, %s3882_s4 }
  0x5e   :  { %p3191_p0 = pnand %p3189_p13, %p3186_p12 }
  0x60   :  { %3194 = shalt.err (!%p3191_p0)
}
  0x61   :  { %s3195_s21 = scalar_lea.vmem %s63_s3, 16  ;;  %s3199_s25 = scalar_lea.vmem %s63_s3, 32 }
  0x62   :  { %p3196_p1 = scmp.ne.s32.totalorder %s63_s3, %s3195_s21  ;;  %p3200_p2 = scmp.lt.s32.totalorder %s63_s3, %s63_s3 }
  0x63   :  { %p3201_p3 = scmp.lt.s32.totalorder %s3199_s25, %s3195_s21 }
  0x65   :  { %p3202_p4 = por %p3201_p3, %p3200_p2 }
  0x67   :  { %p3203_p5 = pnand %p3202_p4, %p3196_p1 }
  0x69   :  { %3206 = shalt.err (!%p3203_p5)
}
  0x6a   :  { %65 = dma.hbm_to_vmem [thread:$0]  %s3882_s4, 16, %s63_s3, [#allocation6]  }
  0x6b   :  { %s3339_s19 = smov [#allocation10]   ;;  %s3340_s26 = smov [#allocation13]  }
  0x6c   :  { %s84_s5 = sshll.u32 %s3339_s19, 4  ;;  %s104_s27 = sshll.u32 %s3340_s26, 4  ;;  %s85_s5 = int_to_ptr.vmem [resolvable:$true] %s84_s5  ;;  %s105_s27 = int_to_ptr.vmem [resolvable:$true] %s104_s27 }
  0x6d   :  { %s3207_s23 = scalar_lea.hbm %s3884_s6, 16 }
  0x6e   :  { %p3208_p6 = scmp.ne.s32.totalorder %s3884_s6, %s3207_s23  ;;  %p3211_p7 = scmp.lt.u32.totalorder %s3207_s23, %s3884_s6 }
  0x70   :  { %p3213_p8 = pnand %p3211_p7, %p3208_p6 }
  0x72   :  { %3216 = shalt.err (!%p3213_p8)
}
  0x73   :  { %s3217_s4 = scalar_lea.vmem %s85_s5, 16  ;;  %s3221_s3 = scalar_lea.vmem %s85_s5, 32 }
  0x74   :  { %p3218_p9 = scmp.ne.s32.totalorder %s85_s5, %s3217_s4  ;;  %p3222_p10 = scmp.lt.s32.totalorder %s85_s5, %s85_s5 }
  0x75   :  { %p3223_p11 = scmp.lt.s32.totalorder %s3221_s3, %s3217_s4 }
  0x77   :  { %p3224_p12 = por %p3223_p11, %p3222_p10 }
  0x79   :  { %p3225_p13 = pnand %p3224_p12, %p3218_p9 }
  0x7b   :  { %3228 = shalt.err (!%p3225_p13)
}
  0x7c   :  { %87 = dma.hbm_to_vmem [thread:$0]  %s3884_s6, 16, %s85_s5, [#allocation9]  }
  0x7d   :  { %s3229_s21 = scalar_lea.hbm %s3886_s8, 64 }
  0x7e   :  { %p3230_p0 = scmp.ne.s32.totalorder %s3886_s8, %s3229_s21  ;;  %p3233_p1 = scmp.lt.u32.totalorder %s3229_s21, %s3886_s8 }
  0x80   :  { %p3235_p2 = pnand %p3233_p1, %p3230_p0 }
  0x82   :  { %3238 = shalt.err (!%p3235_p2)
}
  0x83   :  { %s3239_s26 = scalar_lea.vmem %s105_s27, 64  ;;  %p3244_p4 = scmp.lt.s32.totalorder %s105_s27, %s105_s27 }
  0x84   :  { %p3240_p3 = scmp.ne.s32.totalorder %s105_s27, %s3239_s26  ;;  %p3245_p5 = scmp.lt.s32.totalorder %s3239_s26, %s3239_s26 }
  0x86   :  { %p3246_p6 = por %p3245_p5, %p3244_p4 }
  0x88   :  { %p3247_p7 = pnand %p3246_p6, %p3240_p3 }
  0x8a   :  { %3250 = shalt.err (!%p3247_p7)
}
  0x8b   :  { %107 = dma.hbm_to_vmem [thread:$0]  %s3886_s8, 64, %s105_s27, [#allocation12]  }
  0x8c   :  { %s3341_s28 = smov [#allocation16]   ;;  %s3342_s23 = smov [#allocation17]  }
  0x8d   :  { %s126_s9 = sshll.u32 %s3341_s28, 4  ;;  %s138_s29 = sshll.u32 %s3342_s23, 4  ;;  %s127_s9 = int_to_ptr.vmem [resolvable:$true] %s126_s9  ;;  %s139_s29 = int_to_ptr.vmem [resolvable:$true] %s138_s29 }
  0x8e   :  { %s3251_s20 = scalar_lea.hbm %s3889_s11, 16 }
  0x8f   :  { %p3252_p8 = scmp.ne.s32.totalorder %s3889_s11, %s3251_s20  ;;  %p3255_p9 = scmp.lt.u32.totalorder %s3251_s20, %s3889_s11 }
  0x91   :  { %p3257_p10 = pnand %p3255_p9, %p3252_p8 }
  0x93   :  { %3260 = shalt.err (!%p3257_p10)
}
  0x94   :  { %s3261_s8 = scalar_lea.vmem %s127_s9, 16  ;;  %s3265_s27 = scalar_lea.vmem %s127_s9, 32 }
  0x95   :  { %p3262_p11 = scmp.ne.s32.totalorder %s127_s9, %s3261_s8  ;;  %p3266_p12 = scmp.lt.s32.totalorder %s127_s9, %s127_s9 }
  0x96   :  { %p3267_p13 = scmp.lt.s32.totalorder %s3265_s27, %s3261_s8 }
  0x98   :  { %p3268_p0 = por %p3267_p13, %p3266_p12 }
  0x9a   :  { %p3269_p1 = pnand %p3268_p0, %p3262_p11 }
  0x9c   :  { %3272 = shalt.err (!%p3269_p1)
}
  0x9d   :  { %129 = dma.hbm_to_vmem [thread:$0]  %s3889_s11, 16, %s127_s9, [#allocation15]  }
  0x9e   :  { %s3273_s1 = scalar_lea.hbm %s3891_s13, 16 }
  0x9f   :  { %p3274_p2 = scmp.ne.s32.totalorder %s3891_s13, %s3273_s1  ;;  %p3277_p3 = scmp.lt.u32.totalorder %s3273_s1, %s3891_s13 }
  0xa1   :  { %p3279_p4 = pnand %p3277_p3, %p3274_p2 }
  0xa3   :  { %3282 = shalt.err (!%p3279_p4)
}
  0xa4   :  { %s3283_s5 = scalar_lea.vmem %s139_s29, 16  ;;  %s3287_s28 = scalar_lea.vmem %s139_s29, 32 }
  0xa5   :  { %p3284_p5 = scmp.ne.s32.totalorder %s139_s29, %s3283_s5  ;;  %p3288_p6 = scmp.lt.s32.totalorder %s139_s29, %s139_s29 }
  0xa6   :  { %p3289_p7 = scmp.lt.s32.totalorder %s3287_s28, %s3283_s5 }
  0xa8   :  { %p3290_p8 = por %p3289_p7, %p3288_p6 }
  0xaa   :  { %p3291_p9 = pnand %p3290_p8, %p3284_p5 }
  0xac   :  { %3294 = shalt.err (!%p3291_p9)
}
  0xad   :  { %141 = dma.hbm_to_vmem [thread:$0]  %s3891_s13, 16, %s139_s29, [#allocation18]  }
  0xae   :  { %3317 = dma.done.wait [#allocation3], 256  }
  0xaf   :  { %3318 = vsyncadd [#allocation3], 4294967040 }
  0xb0   :  { %3319 = dma.done.wait [#allocation6], 528  }
  0xb1   :  { %3320 = vsyncadd [#allocation6], 4294966768 }
  0xb2   :  { %3321 = dma.done.wait [#allocation9], 272  }
  0xb3   :  { %3322 = vsyncadd [#allocation9], 4294967024 }
  0xb4   :  { %3323 = dma.done.wait [#allocation12], 96  }
  0xb5   :  { %3324 = vsyncadd [#allocation12], 4294967200 }
  0xb6   :  { %3325 = dma.done.wait [#allocation15], 32  }
  0xb7   :  { %3326 = vsyncadd [#allocation15], 4294967264 }
  0xb8   :  { %3327 = dma.done.wait [#allocation18], 16  }
  0xb9   :  { %3328 = vsyncadd [#allocation18], 4294967280  ;;  %vm194_vm0 = vcmask 1043456   ;;  %vm187_vm1 = vcmask 97280   ;;  %vm3343_vm2 = vmmov 1   ;;  %v178_v0 = vld [vmem:[#allocation2] sm:$0xff] }
  0xba   :  { %vm2897_vm3 = vmpackc.low %vm194_vm0, %vm3343_vm2  ;;  %v179_v1 = vld [vmem:[#allocation2 + $0x8] sm:$0xf]  ;;  %s3897_s29 = sld [smem:[#allocation27_spill]]  ;;  %v368_v4 = vld [vmem:[#allocation8] sm:$0xff]  ;;  %v3344_v11 = vmov 0.0|0.0   ;;  %vm3345_vm4 = vmmov 0  }
  0xbb   :  { %v2896_v3 = vpack.c.bf16 %v179_v1, %v178_v0  ;;  %v369_v5 = vld [vmem:[#allocation8 + $0x8] sm:$0xff]  ;;  %v275_v6 = vld [vmem:[#allocation5] sm:$0xff]  ;;  %v3346_v12 = vmov 0.0   ;;  %v278_v14 = vld [vmem:[#allocation5 + $0x18] sm:$0xff]  ;;  %vm286_vm5 = vcmask 261120   ;;  %s3347_s3 = smov 96  }
  0xbc   :  { %v276_v7 = vld [vmem:[#allocation5 + $0x8] sm:$0xff]  ;;  %v3581_v10 = vpack.c.bf16 %v369_v5, %v368_v4  ;;  %v277_v13 = vld [vmem:[#allocation5 + $0x10] sm:$0xff]  ;;  %v2569_v27 = vld [vmem:[#allocation7] ss:$0 sm:$0xff]  ;;  %s3349_s0 = smov 112   ;;  %vm377_vm6 = vcmask 130048  }
  0xbd   :  { %2898 = vmatprep.subr.msk.bf16.mxu0 %vm2897_vm3, %v2896_v3  ;;  %v2902_v8 = vpack.c.bf16 %v276_v7, %v275_v6  ;;  %v2906_v15 = vpack.c.bf16 %v278_v14, %v277_v13  ;;  %v2565_v16 = vld [vmem:[%s3880_s2] ss:$0 sm:$0xff]  ;;  %v3598_v21 = vld [vmem:[#allocation10] ss:$0 sm:$0xff]  ;;  %s3348_s2 = smov 32   ;;  %vm1234_vm7 = vcmask 31744  }
  0xbe   :  { %2901 = vmatpush3.bf16.msk.msra.mxu0 %vm2897_vm3, %v2896_v3  ;;  %vm1581_vm8 = vcmask 25600  }
  0xbf   :  { %2910 = vmatprep.subr.bf16.mxu0 %v3344_v11  ;;  %2903 = vmatprep.subr.bf16.mxu1 %v2902_v8 }
  0xc0   :  { %v176_v2 = vld [vmem:[%s3897_s29] sm:$0xff]  ;;  %v177_v9 = vld [vmem:[%s3897_s29 + $0x8] sm:$0xff]  ;;  %2905 = vmatpush3.bf16.msra.mxu1 %v2902_v8 }
  0xc1   :  { %2706 = vmatprep.mubr.msk.f32.mxu0 %vm187_vm1, %v176_v2  ;;  %2907 = vmatprep.subr.bf16.mxu1 %v2906_v15 }
  0xc2   :  { %2707 = vmatmul.mubr.msk.f32.vlgmr.msra.gmra.mrb[0].mxu0 %vm187_vm1, %v177_v9 }
  0xc3   :  { %2912 = vmatpush3.bf16.msra.mxu0 %v3581_v10  ;;  %2724 = vmatprep.mubr.msk.f32.mxu0 %vm3345_vm4, %v3346_v12 }
  0xc4   :  { %2913 = vmatprep.subr.bf16.mxu0 %v3344_v11  ;;  %2909 = vmatpush3.bf16.msra.mxu1 %v2906_v15 }
  0xc5   :  { %2916 = vmatprep.subr.bf16.mxu1 %v3344_v11 }
  0xc6   :  { %2725 = vmatmul.mubr.f32.vlgmr.msra.gmra.mrb[2].mxu0 %v3346_v12 }
  0xc7   :  { %2915 = vmatpush3.bf16.msra.mxu0 %v3581_v10  ;;  %2731 = vmatprep.mubr.msk.f32.mxu0 %vm3345_vm4, %v3346_v12 }
  0xc8   :  { %2919 = vmatprep.subr.bf16.mxu0 %v3344_v11 }
 0x195   :  { %v2708_v17 = vpop.f32.mrb[0].mxu0 }
 0x196   :  { %v270_v18 = vadd.f32 %v2708_v17, %v2565_v16  ;;  %v264_v19 = vpop.f32.mrb[1].mxu0 }
 0x197   :  { %v265_v20 = vadd.f32 %v2565_v16, %v264_v19 }
 0x198   :  { %v274_v24 = vmax.f32 %v270_v18, 0.0 }
 0x199   :  { %v273_v22 = vmax.f32 %v265_v20, 0.0  ;;  %v447_v23 = vpop.f32.mrb[2].mxu0 }
 0x19a   :  { %v448_v25 = vadd.f32 %v3598_v21, %v447_v23  ;;  %v2726_v26 = vpop.f32.mrb[3].mxu0 }
 0x19b   :  { %2717 = vmatprep.mubr.msk.f32.mxu1 %vm286_vm5, %v273_v22 }
 0x19c   :  { %2718 = vmatmul.mubr.msk.f32.vlgmr.msra.gmra.mrb[0].mxu1 %vm286_vm5, %v274_v24  ;;  %459 = vrot.lane.b32.xlu0 %v448_v25, %s3347_s3 }
 0x19d   :  { %2918 = vmatpush3.bf16.msra.mxu1 %v3581_v10  ;;  %2738 = vmatprep.mubr.msk.f32.mxu1 %vm3345_vm4, %v3346_v12 }
 0x19e   :  { %2922 = vmatprep.subr.bf16.mxu1 %v3344_v11 }
 0x20e   :  { %v460_v36 = vpop.permute.xlu0 %459 }
 0x26f   :  { %v2719_v28 = vpop.f32.mrb[0].mxu1 }
 0x270   :  { %v3608_v29 = vadd.f32 %v2719_v28, %v2569_v27  ;;  %v359_v30 = vpop.f32.mrb[1].mxu1 }
 0x271   :  { %v3610_v31 = vadd.f32 %v2569_v27, %v359_v30 }
 0x273   :  { %v451_v32 = vadd.f32 %v448_v25, %v3610_v31 }
 0x275   :  { %v2573_v33 = vmul.f32 -1.442695, %v451_v32 }
 0x277   :  { %3003 = vpow2.f32 %v2573_v33 }
 0x281   :  { %v3004_v34 = vpop.eup %3003 }
 0x282   :  { %v455_v35 = vadd.f32 1.0, %v3004_v34 }
 0x284   :  { %3005 = vrcp.f32 %v455_v35 }
 0x28e   :  { %v3006_v37 = vpop.eup %3005 }
 0x28f   :  { %v462_v38 = vmul.f32 %v3006_v37, %v460_v36  ;;  %v469_v42 = vsub.f32 1.0, %v3006_v37  ;;  %v475_v44 = vmul.f32 0.0, %v3006_v37 }
 0x291   :  { %464 = vrot.lane.b32.xlu0 %v462_v38, %s3348_s2 }
 0x303   :  { %v465_v39 = vpop.permute.xlu0 %464 }
 0x304   :  { %v467_v40 = vadd.f32 %v465_v39, %v3610_v31 }
 0x306   :  { %3007 = vtanh.f32 %v467_v40 }
 0x310   :  { %v3008_v41 = vpop.eup %3007 }
 0x311   :  { %471 = vrot.lane.b32.xlu1 %v3008_v41, %s3349_s0 }
 0x383   :  { %v472_v43 = vpop.permute.xlu1 %471 }
 0x384   :  { %v474_v45 = vmul.f32 %v472_v43, %v469_v42 }
 0x386   :  { %v476_v46 = vadd.f32 %v475_v44, %v474_v45 }
 0x388   :  { %478 = vrot.lane.b32.xlu1 %v476_v46, %s3349_s0  ;;  %v578_v62 = vrot.slane %v476_v46, 6 }
 0x3fa   :  { %v479_v47 = vpop.permute.xlu1 %478 }
 0x3fb   :  { %2732 = vmatmul.mubr.msk.f32.vlgmr.msra.gmra.mrb[4].mxu0 %vm377_vm6, %v479_v47 }
 0x3fc   :  { %2921 = vmatpush3.bf16.msra.mxu0 %v3581_v10  ;;  %2745 = vmatprep.mubr.msk.f32.mxu0 %vm3345_vm4, %v3346_v12 }
 0x3fd   :  { %2925 = vmatprep.subr.bf16.mxu0 %v3344_v11 }
 0x4ce   :  { %v548_v48 = vpop.f32.mrb[4].mxu0 }
 0x4cf   :  { %v549_v49 = vadd.f32 %v3598_v21, %v548_v48  ;;  %v2733_v50 = vpop.f32.mrb[5].mxu0 }
 0x4d1   :  { %v553_v51 = vrot.slane %v549_v49, 6 }
 0x4d3   :  { %562 = vrot.lane.b32.xlu0 %v553_v51, %s3347_s3  ;;  %v555_v52 = vadd.f32 %v553_v51, %v3610_v31 }
 0x4d5   :  { %v2575_v53 = vmul.f32 -1.442695, %v555_v52 }
 0x4d7   :  { %3009 = vpow2.f32 %v2575_v53 }
 0x4e1   :  { %v3010_v54 = vpop.eup %3009 }
 0x4e2   :  { %v559_v55 = vadd.f32 1.0, %v3010_v54 }
 0x4e4   :  { %3011 = vrcp.f32 %v559_v55 }
 0x4ee   :  { %v3012_v56 = vpop.eup %3011 }
 0x4ef   :  { %v572_v63 = vsub.f32 1.0, %v3012_v56  ;;  %v580_v2 = vmul.f32 %v3012_v56, %v578_v62 }
 0x545   :  { %v563_v57 = vpop.permute.xlu0 %562 }
 0x546   :  { %v565_v58 = vmul.f32 %v3012_v56, %v563_v57 }
 0x548   :  { %567 = vrot.lane.b32.xlu1 %v565_v58, %s3348_s2 }
 0x5ba   :  { %v568_v59 = vpop.permute.xlu1 %567 }
 0x5bb   :  { %v570_v60 = vadd.f32 %v568_v59, %v3610_v31 }
 0x5bd   :  { %3013 = vtanh.f32 %v570_v60 }
 0x5c7   :  { %v3014_v61 = vpop.eup %3013 }
 0x5c8   :  { %574 = vrot.lane.b32.xlu0 %v3014_v61, %s3349_s0 }
 0x63a   :  { %v575_v0 = vpop.permute.xlu0 %574 }
 0x63b   :  { %v577_v1 = vmul.f32 %v575_v0, %v572_v63 }
 0x63d   :  { %v581_v3 = vadd.f32 %v580_v2, %v577_v1 }
 0x63f   :  { %v583_v4 = vrot.slane %v581_v3, 2  ;;  %v684_v24 = vrot.slane %v581_v3, 6 }
 0x641   :  { %584 = vrot.lane.b32.xlu1 %v583_v4, %s3349_s0 }
 0x6b3   :  { %v585_v5 = vpop.permute.xlu1 %584 }
 0x6b4   :  { %2739 = vmatmul.mubr.msk.f32.vlgmr.msra.gmra.mrb[2].mxu1 %vm377_vm6, %v585_v5 }
 0x6b5   :  { %2924 = vmatpush3.bf16.msra.mxu1 %v3581_v10  ;;  %2752 = vmatprep.mubr.msk.f32.mxu1 %vm3345_vm4, %v3346_v12 }
 0x6b6   :  { %2928 = vmatprep.subr.bf16.mxu1 %v3344_v11 }
 0x787   :  { %v654_v6 = vpop.f32.mrb[2].mxu1 }
 0x788   :  { %v655_v7 = vadd.f32 %v3598_v21, %v654_v6  ;;  %v2740_v8 = vpop.f32.mrb[3].mxu1 }
 0x78a   :  { %v659_v9 = vrot.slane %v655_v7, 4 }
 0x78c   :  { %668 = vrot.lane.b32.xlu0 %v659_v9, %s3347_s3  ;;  %v661_v13 = vadd.f32 %v659_v9, %v3610_v31 }
 0x78e   :  { %v2577_v14 = vmul.f32 -1.442695, %v661_v13 }
 0x790   :  { %3015 = vpow2.f32 %v2577_v14 }
 0x79a   :  { %v3016_v15 = vpop.eup %3015 }
 0x79b   :  { %v665_v16 = vadd.f32 1.0, %v3016_v15 }
 0x79d   :  { %3017 = vrcp.f32 %v665_v16 }
 0x7a7   :  { %v3018_v17 = vpop.eup %3017 }
 0x7a8   :  { %v678_v25 = vsub.f32 1.0, %v3018_v17  ;;  %v686_v27 = vmul.f32 %v3018_v17, %v684_v24 }
 0x7fe   :  { %v669_v18 = vpop.permute.xlu0 %668 }
 0x7ff   :  { %v671_v19 = vmul.f32 %v3018_v17, %v669_v18 }
 0x801   :  { %673 = vrot.lane.b32.xlu1 %v671_v19, %s3348_s2 }
 0x873   :  { %v674_v20 = vpop.permute.xlu1 %673 }
 0x874   :  { %v676_v22 = vadd.f32 %v674_v20, %v3610_v31 }
 0x876   :  { %3019 = vtanh.f32 %v676_v22 }
 0x880   :  { %v3020_v23 = vpop.eup %3019 }
 0x881   :  { %680 = vrot.lane.b32.xlu0 %v3020_v23, %s3349_s0 }
 0x8f3   :  { %v681_v26 = vpop.permute.xlu0 %680 }
 0x8f4   :  { %v683_v28 = vmul.f32 %v681_v26, %v678_v25 }
 0x8f6   :  { %v687_v30 = vadd.f32 %v686_v27, %v683_v28 }
 0x8f8   :  { %v689_v32 = vrot.slane %v687_v30, 4  ;;  %v790_v48 = vrot.slane %v687_v30, 6 }
 0x8fa   :  { %690 = vrot.lane.b32.xlu1 %v689_v32, %s3349_s0 }
 0x96c   :  { %v691_v33 = vpop.permute.xlu1 %690 }
 0x96d   :  { %2746 = vmatmul.mubr.msk.f32.vlgmr.msra.gmra.mrb[6].mxu0 %vm377_vm6, %v691_v33 }
 0x96e   :  { %2927 = vmatpush3.bf16.msra.mxu0 %v3581_v10  ;;  %2759 = vmatprep.mubr.msk.f32.mxu0 %vm3345_vm4, %v3346_v12 }
 0x96f   :  { %2931 = vmatprep.subr.bf16.mxu0 %v3344_v11 }
 0xa40   :  { %v760_v34 = vpop.f32.mrb[6].mxu0 }
 0xa41   :  { %v761_v35 = vadd.f32 %v3598_v21, %v760_v34  ;;  %v2747_v36 = vpop.f32.mrb[7].mxu0 }
 0xa43   :  { %v765_v37 = vrot.slane %v761_v35, 2 }
 0xa45   :  { %774 = vrot.lane.b32.xlu0 %v765_v37, %s3347_s3  ;;  %v767_v38 = vadd.f32 %v765_v37, %v3610_v31 }
 0xa47   :  { %v2579_v39 = vmul.f32 -1.442695, %v767_v38 }
 0xa49   :  { %3021 = vpow2.f32 %v2579_v39 }
 0xa53   :  { %v3022_v40 = vpop.eup %3021 }
 0xa54   :  { %v771_v41 = vadd.f32 1.0, %v3022_v40 }
 0xa56   :  { %3023 = vrcp.f32 %v771_v41 }
 0xa60   :  { %v3024_v42 = vpop.eup %3023 }
 0xa61   :  { %v784_v49 = vsub.f32 1.0, %v3024_v42  ;;  %v792_v51 = vmul.f32 %v3024_v42, %v790_v48 }
 0xab7   :  { %v775_v43 = vpop.permute.xlu0 %774 }
 0xab8   :  { %v777_v44 = vmul.f32 %v3024_v42, %v775_v43 }
 0xaba   :  { %779 = vrot.lane.b32.xlu1 %v777_v44, %s3348_s2 }
 0xb2c   :  { %v780_v45 = vpop.permute.xlu1 %779 }
 0xb2d   :  { %v782_v46 = vadd.f32 %v780_v45, %v3610_v31 }
 0xb2f   :  { %3025 = vtanh.f32 %v782_v46 }
 0xb39   :  { %v3026_v47 = vpop.eup %3025 }
 0xb3a   :  { %786 = vrot.lane.b32.xlu0 %v3026_v47, %s3349_s0 }
 0xbac   :  { %v787_v50 = vpop.permute.xlu0 %786 }
 0xbad   :  { %v789_v52 = vmul.f32 %v787_v50, %v784_v49 }
 0xbaf   :  { %v793_v53 = vadd.f32 %v792_v51, %v789_v52 }
 0xbb1   :  { %v795_v54 = vrot.slane %v793_v53, 6 }
 0xbb3   :  { %796 = vrot.lane.b32.xlu1 %v795_v54, %s3349_s0 }
 0xc25   :  { %v797_v55 = vpop.permute.xlu1 %796 }
 0xc26   :  { %2753 = vmatmul.mubr.msk.f32.vlgmr.msra.gmra.mrb[4].mxu1 %vm377_vm6, %v797_v55 }
 0xc27   :  { %2930 = vmatpush3.bf16.msra.mxu1 %v3581_v10  ;;  %2766 = vmatprep.mubr.msk.f32.mxu1 %vm3345_vm4, %v3346_v12 }
 0xc28   :  { %2776 = vmatprep.subr.mxu1 %v3346_v12 }
 0xcf9   :  { %v866_v31 = vpop.f32.mrb[4].mxu1 }
 0xcfa   :  { %v867_v56 = vadd.f32 %v3598_v21, %v866_v31  ;;  %v2754_v57 = vpop.f32.mrb[5].mxu1 }
 0xcfc   :  { %878 = vrot.lane.b32.xlu0 %v867_v56, %s3347_s3  ;;  %v870_v58 = vadd.f32 %v867_v56, %v3608_v29 }
 0xcfe   :  { %v2581_v59 = vmul.f32 -1.442695, %v870_v58 }
 0xd00   :  { %3027 = vpow2.f32 %v2581_v59 }
 0xd0a   :  { %v3028_v60 = vpop.eup %3027 }
 0xd0b   :  { %v874_v61 = vadd.f32 1.0, %v3028_v60 }
 0xd0d   :  { %3029 = vrcp.f32 %v874_v61 }
 0xd17   :  { %v3030_v62 = vpop.eup %3029 }
 0xd18   :  { %v888_v4 = vsub.f32 1.0, %v3030_v62  ;;  %v895_v6 = vmul.f32 %v3030_v62, %v795_v54 }
 0xd6e   :  { %v879_v63 = vpop.permute.xlu0 %878 }
 0xd6f   :  { %v881_v0 = vmul.f32 %v3030_v62, %v879_v63 }
 0xd71   :  { %883 = vrot.lane.b32.xlu1 %v881_v0, %s3348_s2 }
 0xde3   :  { %v884_v1 = vpop.permute.xlu1 %883 }
 0xde4   :  { %v886_v2 = vadd.f32 %v884_v1, %v3608_v29 }
 0xde6   :  { %3031 = vtanh.f32 %v886_v2 }
 0xdf0   :  { %v3032_v3 = vpop.eup %3031 }
 0xdf1   :  { %890 = vrot.lane.b32.xlu0 %v3032_v3, %s3349_s0 }
 0xe63   :  { %v891_v5 = vpop.permute.xlu0 %890 }
 0xe64   :  { %v893_v7 = vmul.f32 %v891_v5, %v888_v4  ;;  %v3694_v5 = vld [vmem:[#allocation13] sm:$0xf] }
 0xe66   :  { %v896_v8 = vadd.f32 %v895_v6, %v893_v7  ;;  %v1227_v6 = vld [vmem:[#allocation11] sm:$0x3] }
 0xe68   :  { %898 = vrot.lane.b32.xlu1 %v896_v8, %s3349_s0  ;;  %v998_v27 = vrot.slane %v896_v8, 6  ;;  %v1216_v8 = vld [vmem:[%s3888_s10] sm:$0xff] }
 0xeda   :  { %v899_v9 = vpop.permute.xlu1 %898 }
 0xedb   :  { %2760 = vmatmul.mubr.msk.f32.vlgmr.msra.gmra.mrb[8].mxu0 %vm377_vm6, %v899_v9  ;;  %v1217_v9 = vld [vmem:[%s3888_s10 + $0x8] sm:$0xff] }
 0xedc   :  { %2933 = vmatpush3.bf16.msra.mxu0 %v3581_v10  ;;  %2773 = vmatprep.mubr.msk.f32.mxu0 %vm3345_vm4, %v3346_v12 }
 0xedd   :  { %2934 = vmatprep.subr.bf16.mxu0 %v3344_v11 }
 0xfae   :  { %v968_v13 = vpop.f32.mrb[8].mxu0 }
 0xfaf   :  { %v969_v14 = vadd.f32 %v3598_v21, %v968_v13  ;;  %v2761_v15 = vpop.f32.mrb[9].mxu0  ;;  %v3709_v13 = vpack.c.bf16 %v1217_v9, %v1216_v8 }
 0xfb0   :  { %v1222_v15 = vld [vmem:[%s3890_s12 + $0x8] sm:$0xff] }
 0xfb1   :  { %v973_v16 = vrot.slane %v969_v14, 6  ;;  %v1221_v14 = vld [vmem:[%s3890_s12] sm:$0xff] }
 0xfb3   :  { %982 = vrot.lane.b32.xlu0 %v973_v16, %s3347_s3  ;;  %v975_v17 = vadd.f32 %v973_v16, %v3608_v29  ;;  %v3720_v16 = vpack.c.bf16 %v1222_v15, %v1221_v14 }
 0xfb5   :  { %v2583_v18 = vmul.f32 -1.442695, %v975_v17  ;;  %v1219_v17 = vld [vmem:[%s3888_s10 + $0x18] sm:$0xff] }
 0xfb7   :  { %3033 = vpow2.f32 %v2583_v18 }
 0xfc1   :  { %v3034_v19 = vpop.eup %3033 }
 0xfc2   :  { %v979_v20 = vadd.f32 1.0, %v3034_v19 }
 0xfc4   :  { %3035 = vrcp.f32 %v979_v20  ;;  %v3734_v20 = vld [vmem:[#allocation14] ss:$0 sm:$0xff] }
 0xfce   :  { %v3036_v10 = vpop.eup %3035 }
 0xfcf   :  { %v992_v28 = vsub.f32 1.0, %v3036_v10  ;;  %v1000_v33 = vmul.f32 %v3036_v10, %v998_v27 }
0x1025   :  { %v983_v22 = vpop.permute.xlu0 %982 }
0x1026   :  { %v985_v23 = vmul.f32 %v3036_v10, %v983_v22 }
0x1028   :  { %987 = vrot.lane.b32.xlu1 %v985_v23, %s3348_s2 }
0x109a   :  { %v988_v24 = vpop.permute.xlu1 %987 }
0x109b   :  { %v990_v25 = vadd.f32 %v988_v24, %v3608_v29 }
0x109d   :  { %3037 = vtanh.f32 %v990_v25 }
0x10a7   :  { %v3038_v26 = vpop.eup %3037 }
0x10a8   :  { %994 = vrot.lane.b32.xlu0 %v3038_v26, %s3349_s0 }
0x111a   :  { %v995_v30 = vpop.permute.xlu0 %994 }
0x111b   :  { %v997_v32 = vmul.f32 %v995_v30, %v992_v28 }
0x111d   :  { %v1001_v34 = vadd.f32 %v1000_v33, %v997_v32 }
0x111f   :  { %v1003_v35 = vrot.slane %v1001_v34, 2  ;;  %v1104_v51 = vrot.slane %v1001_v34, 6 }
0x1121   :  { %1004 = vrot.lane.b32.xlu1 %v1003_v35, %s3349_s0 }
0x1193   :  { %v1005_v36 = vpop.permute.xlu1 %1004 }
0x1194   :  { %2767 = vmatmul.mubr.msk.f32.vlgmr.msra.gmra.mrb[6].mxu1 %vm377_vm6, %v1005_v36 }
0x1195   :  { %2778 = vmatprep.mubr.msk.f32.mxu1 %vm3345_vm4, %v3346_v12  ;;  %2777 = vmatpush3.msk.msra.mxu1 %vm194_vm0, %v3694_v5 }
0x1196   :  { %2940 = vmatprep.subr.bf16.mxu1 %v3344_v11 }
0x1198   :  { %2779 = vmatmul.mubr.msk.f32.vlgmr.msra.gmra.mrb[8].mxu1 %vm1234_vm7, %v1227_v6 }
0x1199   :  { %2796 = vmatprep.mubr.msk.f32.mxu1 %vm3345_vm4, %v3346_v12  ;;  %2942 = vmatpush3.bf16.msra.mxu1 %v3720_v16 }
0x119a   :  { %2943 = vmatprep.subr.bf16.mxu1 %v3344_v11 }
0x1267   :  { %v1074_v37 = vpop.f32.mrb[6].mxu1 }
0x1268   :  { %v1075_v38 = vadd.f32 %v3598_v21, %v1074_v37  ;;  %v2768_v39 = vpop.f32.mrb[7].mxu1  ;;  %v3747_v37 = vld [vmem:[#allocation17] ss:$0 sm:$0xff] }
0x126a   :  { %v1079_v40 = vrot.slane %v1075_v38, 4 }
0x126b   :  { %v1307_v10 = vpop.f32.mrb[8].mxu1 }
0x126c   :  { %1088 = vrot.lane.b32.xlu0 %v1079_v40, %s3347_s3  ;;  %v1081_v41 = vadd.f32 %v1079_v40, %v3608_v29  ;;  %v1308_v22 = vadd.f32 %v3734_v20, %v1307_v10  ;;  %v2780_v23 = vpop.f32.mrb[9].mxu1 }
0x126e   :  { %v2585_v42 = vmul.f32 -1.442695, %v1081_v41  ;;  %v1311_v24 = vmax.f32 %v1308_v22, 0.0  ;;  %v3751_v41 = vld [vmem:[#allocation16] ss:$0 sm:$0xff] }
0x1270   :  { %3039 = vpow2.f32 %v2585_v42 }
0x127a   :  { %v3040_v43 = vpop.eup %3039 }
0x127b   :  { %v1085_v44 = vadd.f32 1.0, %v3040_v43 }
0x127d   :  { %3041 = vrcp.f32 %v1085_v44 }
0x1287   :  { %v3042_v45 = vpop.eup %3041 }
0x1288   :  { %v1098_v52 = vsub.f32 1.0, %v3042_v45  ;;  %v1106_v54 = vmul.f32 %v3042_v45, %v1104_v51 }
0x12de   :  { %v1089_v46 = vpop.permute.xlu0 %1088 }
0x12df   :  { %v1091_v47 = vmul.f32 %v3042_v45, %v1089_v46 }
0x12e1   :  { %1093 = vrot.lane.b32.xlu1 %v1091_v47, %s3348_s2 }
0x1353   :  { %v1094_v48 = vpop.permute.xlu1 %1093 }
0x1354   :  { %v1096_v49 = vadd.f32 %v1094_v48, %v3608_v29 }
0x1356   :  { %3043 = vtanh.f32 %v1096_v49 }
0x1360   :  { %v3044_v50 = vpop.eup %3043 }
0x1361   :  { %1100 = vrot.lane.b32.xlu0 %v3044_v50, %s3349_s0 }
0x13d3   :  { %v1101_v53 = vpop.permute.xlu0 %1100 }
0x13d4   :  { %v1103_v55 = vmul.f32 %v1101_v53, %v1098_v52  ;;  %v1224_v52 = vld [vmem:[%s3892_s14] sm:$0xff]  ;;  %v1225_v53 = vld [vmem:[%s3892_s14 + $0x8] sm:$0xff] }
0x13d6   :  { %v1107_v31 = vadd.f32 %v1106_v54, %v1103_v55  ;;  %v3761_v54 = vpack.c.bf16 %v1225_v53, %v1224_v52 }
0x13d8   :  { %v1109_v56 = vrot.slane %v1107_v31, 4  ;;  %v1210_v25 = vrot.slane %v1107_v31, 6 }
0x13da   :  { %1110 = vrot.lane.b32.xlu1 %v1109_v56, %s3349_s0 }
0x144c   :  { %v1111_v57 = vpop.permute.xlu1 %1110 }
0x144d   :  { %2774 = vmatmul.mubr.msk.f32.vlgmr.msra.gmra.mrb[10].mxu0 %vm377_vm6, %v1111_v57 }
0x144e   :  { %2789 = vmatprep.mubr.msk.f32.mxu0 %vm3345_vm4, %v3346_v12  ;;  %2936 = vmatpush3.bf16.msra.mxu0 %v3709_v13 }
0x144f   :  { %2937 = vmatprep.subr.bf16.mxu0 %v3344_v11 }
0x1520   :  { %v1180_v58 = vpop.f32.mrb[10].mxu0 }
0x1521   :  { %v1181_v59 = vadd.f32 %v3598_v21, %v1180_v58  ;;  %v2775_v60 = vpop.f32.mrb[11].mxu0 }
0x1523   :  { %v1185_v61 = vrot.slane %v1181_v59, 2 }
0x1525   :  { %1194 = vrot.lane.b32.xlu0 %v1185_v61, %s3347_s3  ;;  %v1187_v62 = vadd.f32 %v1185_v61, %v3608_v29  ;;  %v3777_v61 = vld [vmem:[%s3893_s15] ss:$0 sm:$0xff]  ;;  %s3350_s15 = smov [#allocation19]  }
0x1526   :  { %s2548_s9 = sshll.u32 %s3350_s15, 4  ;;  %s2549_s9 = int_to_ptr.vmem [resolvable:$true] %s2548_s9 }
0x1527   :  { %v2587_v63 = vmul.f32 -1.442695, %v1187_v62  ;;  %s3295_s13 = scalar_lea.vmem %s2549_s9, 128  ;;  %p3300_p11 = scmp.lt.s32.totalorder %s2549_s9, %s2549_s9 }
0x1528   :  { %p3296_p10 = scmp.ne.s32.totalorder %s2549_s9, %s3295_s13  ;;  %p3301_p12 = scmp.lt.s32.totalorder %s3295_s13, %s3295_s13 }
0x1529   :  { %3045 = vpow2.f32 %v2587_v63 }
0x152a   :  { %p3302_p13 = por %p3301_p12, %p3300_p11 }
0x152c   :  { %p3303_p0 = pnand %p3302_p13, %p3296_p10 }
0x1533   :  { %v3046_v0 = vpop.eup %3045 }
0x1534   :  { %v1191_v1 = vadd.f32 1.0, %v3046_v0 }
0x1536   :  { %3047 = vrcp.f32 %v1191_v1 }
0x1540   :  { %v3048_v2 = vpop.eup %3047 }
0x1541   :  { %v1204_v26 = vsub.f32 1.0, %v3048_v2  ;;  %v1212_v28 = vmul.f32 %v3048_v2, %v1210_v25 }
0x1597   :  { %v1195_v3 = vpop.permute.xlu0 %1194 }
0x1598   :  { %v1197_v4 = vmul.f32 %v3048_v2, %v1195_v3 }
0x159a   :  { %1199 = vrot.lane.b32.xlu1 %v1197_v4, %s3348_s2 }
0x160c   :  { %v1200_v21 = vpop.permute.xlu1 %1199 }
0x160d   :  { %v1202_v7 = vadd.f32 %v1200_v21, %v3608_v29  ;;  %v1218_v29 = vld [vmem:[%s3888_s10 + $0x10] sm:$0xff] }
0x160e   :  { %v3726_v18 = vpack.c.bf16 %v1219_v17, %v1218_v29 }
0x160f   :  { %3049 = vtanh.f32 %v1202_v7 }
0x1610   :  { %2939 = vmatpush3.bf16.msra.mxu0 %v3726_v18 }
0x1611   :  { %2806 = vmatprep.subr.mxu0 %v3346_v12 }
0x1613   :  { %2790 = vmatmul.mubr.msk.f32.vlgmr.msra.gmra.mrb[12].mxu0 %vm286_vm5, %v1311_v24 }
0x1614   :  { %2807 = vmatpush3.msk.msra.mxu0 %vm194_vm0, %v3694_v5  ;;  %2808 = vmatprep.mubr.msk.f32.mxu0 %vm3345_vm4, %v3346_v12 }
0x1615   :  { %2952 = vmatprep.subr.bf16.mxu0 %v3344_v11 }
0x1619   :  { %v3050_v19 = vpop.eup %3049 }
0x161a   :  { %1206 = vrot.lane.b32.xlu0 %v3050_v19, %s3349_s0 }
0x168c   :  { %v1207_v27 = vpop.permute.xlu0 %1206 }
0x168d   :  { %v1209_v30 = vmul.f32 %v1207_v27, %v1204_v26 }
0x168f   :  { %v1213_v32 = vadd.f32 %v1212_v28, %v1209_v30 }
0x1691   :  { %v1398_v33 = vrot.slane %v1213_v32, 6 }
0x1693   :  { %1399 = vrot.lane.b32.xlu1 %v1398_v33, %s3349_s0 }
0x16e6   :  { %v1387_v35 = vpop.f32.mrb[12].mxu0 }
0x16e7   :  { %v2791_v36 = vpop.f32.mrb[13].mxu0  ;;  %v1388_v42 = vadd.f32 %v3751_v41, %v1387_v35 }
0x1705   :  { %v1400_v34 = vpop.permute.xlu1 %1399 }
0x1706   :  { %2797 = vmatmul.mubr.msk.f32.vlgmr.msra.gmra.mrb[10].mxu1 %vm377_vm6, %v1400_v34 }
0x1707   :  { %2803 = vmatprep.mubr.msk.f32.mxu1 %vm3345_vm4, %v3346_v12  ;;  %2945 = vmatpush3.bf16.msra.mxu1 %v3761_v54 }
0x1708   :  { %2946 = vmatprep.subr.bf16.mxu1 %v3344_v11 }
0x17d9   :  { %v1469_v38 = vpop.f32.mrb[10].mxu1 }
0x17da   :  { %v1470_v39 = vadd.f32 %v3747_v37, %v1469_v38  ;;  %v2798_v40 = vpop.f32.mrb[11].mxu1 }
0x17dc   :  { %1481 = vrot.lane.b32.xlu0 %v1470_v39, %s3347_s3  ;;  %v1473_v43 = vadd.f32 %v1470_v39, %v1388_v42 }
0x17de   :  { %v2595_v44 = vmul.f32 -1.442695, %v1473_v43 }
0x17e0   :  { %3051 = vpow2.f32 %v2595_v44 }
0x17ea   :  { %v3052_v45 = vpop.eup %3051 }
0x17eb   :  { %v1477_v46 = vadd.f32 1.0, %v3052_v45 }
0x17ed   :  { %3053 = vrcp.f32 %v1477_v46 }
0x17f7   :  { %v3054_v47 = vpop.eup %3053 }
0x17f8   :  { %v1491_v31 = vsub.f32 1.0, %v3054_v47  ;;  %v1498_v57 = vmul.f32 %v3054_v47, %v1398_v33 }
0x184e   :  { %v1482_v48 = vpop.permute.xlu0 %1481 }
0x184f   :  { %v1484_v49 = vmul.f32 %v3054_v47, %v1482_v48 }
0x1851   :  { %1486 = vrot.lane.b32.xlu1 %v1484_v49, %s3348_s2 }
0x18c3   :  { %v1487_v50 = vpop.permute.xlu1 %1486 }
0x18c4   :  { %v1489_v51 = vadd.f32 %v1487_v50, %v1388_v42 }
0x18c6   :  { %3055 = vtanh.f32 %v1489_v51 }
0x18d0   :  { %v3056_v55 = vpop.eup %3055 }
0x18d1   :  { %1493 = vrot.lane.b32.xlu0 %v3056_v55, %s3349_s0 }
0x1943   :  { %v1494_v56 = vpop.permute.xlu0 %1493 }
0x1944   :  { %v1496_v58 = vmul.f32 %v1494_v56, %v1491_v31 }
0x1946   :  { %v1499_v59 = vadd.f32 %v1498_v57, %v1496_v58 }
0x1948   :  { %1507 = vrot.lane.b32.xlu1 %v1499_v59, %s3349_s0 }
0x19ba   :  { %v1508_v60 = vpop.permute.xlu1 %1507 }
0x19bb   :  { %2804 = vmatmul.mubr.msk.f32.vlgmr.msra.gmra.mrb[12].mxu1 %vm377_vm6, %v1508_v60 }
0x19bc   :  { %2948 = vmatpush3.bf16.msra.mxu1 %v3709_v13  ;;  %2819 = vmatprep.mubr.msk.f32.mxu1 %vm3345_vm4, %v3346_v12 }
0x19bd   :  { %2949 = vmatprep.subr.bf16.mxu1 %v3344_v11 }
0x19c0   :  { %2951 = vmatpush3.bf16.msra.mxu1 %v3726_v18 }
0x19c1   :  { %2836 = vmatprep.subr.mxu1 %v3346_v12 }
0x1a8e   :  { %v1577_v62 = vpop.f32.mrb[12].mxu1 }
0x1a8f   :  { %v1578_v63 = vadd.f32 %v3777_v61, %v1577_v62  ;;  %v2805_v0 = vpop.f32.mrb[13].mxu1 }
0x1a91   :  { %1582 = vst.msk [vmem:[#allocation19] sm:$0x3] %vm1581_vm8, %v1578_v63  ;;  %2809 = vmatmul.mubr.msk.f32.vlgmr.msra.gmra.mrb[14].mxu0 %vm1234_vm7, %v1578_v63 }
0x1a92   :  { %2954 = vmatpush3.bf16.msra.mxu0 %v3720_v16  ;;  %2826 = vmatprep.mubr.msk.f32.mxu0 %vm3345_vm4, %v3346_v12 }
0x1a93   :  { %2955 = vmatprep.subr.bf16.mxu0 %v3344_v11 }
0x1a95   :  { %2827 = vmatmul.mubr.msk.f32.vlgmr.msra.gmra.mrb[16].mxu0 %vm377_vm6, %v1508_v60 }
0x1a96   :  { %2957 = vmatpush3.bf16.msra.mxu0 %v3761_v54  ;;  %2833 = vmatprep.mubr.msk.f32.mxu0 %vm3345_vm4, %v3346_v12 }
0x1a97   :  { %2958 = vmatprep.subr.bf16.mxu0 %v3344_v11 }
0x1b64   :  { %v1652_v1 = vpop.f32.mrb[14].mxu0 }
0x1b65   :  { %v1653_v2 = vadd.f32 %v3734_v20, %v1652_v1  ;;  %v2810_v3 = vpop.f32.mrb[15].mxu0 }
0x1b67   :  { %v1656_v4 = vmax.f32 %v1653_v2, 0.0 }
0x1b68   :  { %v1796_v6 = vpop.f32.mrb[16].mxu0 }
0x1b69   :  { %v1797_v21 = vadd.f32 %v3747_v37, %v1796_v6  ;;  %2820 = vmatmul.mubr.msk.f32.vlgmr.msra.gmra.mrb[14].mxu1 %vm286_vm5, %v1656_v4  ;;  %v2828_v7 = vpop.f32.mrb[17].mxu0 }
0x1b6a   :  { %2837 = vmatpush3.msk.msra.mxu1 %vm194_vm0, %v3694_v5  ;;  %2838 = vmatprep.mubr.msk.f32.mxu1 %vm3345_vm4, %v3346_v12 }
0x1b6b   :  { %1808 = vrot.lane.b32.xlu0 %v1797_v21, %s3347_s3  ;;  %2964 = vmatprep.subr.bf16.mxu1 %v3344_v11 }
0x1bdd   :  { %v1809_v22 = vpop.permute.xlu0 %1808 }
0x1c3c   :  { %v1726_v8 = vpop.f32.mrb[14].mxu1 }
0x1c3d   :  { %v1727_v9 = vadd.f32 %v3751_v41, %v1726_v8  ;;  %v2821_v14 = vpop.f32.mrb[15].mxu1 }
0x1c3f   :  { %v1800_v15 = vadd.f32 %v1797_v21, %v1727_v9 }
0x1c41   :  { %v2602_v29 = vmul.f32 -1.442695, %v1800_v15 }
0x1c43   :  { %3057 = vpow2.f32 %v2602_v29 }
0x1c4d   :  { %v3058_v17 = vpop.eup %3057 }
0x1c4e   :  { %v1804_v19 = vadd.f32 1.0, %v3058_v17 }
0x1c50   :  { %3059 = vrcp.f32 %v1804_v19 }
0x1c5a   :  { %v3060_v10 = vpop.eup %3059 }
0x1c5b   :  { %v1811_v23 = vmul.f32 %v3060_v10, %v1809_v22  ;;  %v1818_v27 = vsub.f32 1.0, %v3060_v10  ;;  %v1824_v30 = vmul.f32 %v3060_v10, %v1499_v59 }
0x1c5d   :  { %1813 = vrot.lane.b32.xlu1 %v1811_v23, %s3348_s2 }
0x1ccf   :  { %v1814_v24 = vpop.permute.xlu1 %1813 }
0x1cd0   :  { %v1816_v25 = vadd.f32 %v1814_v24, %v1727_v9 }
0x1cd2   :  { %3061 = vtanh.f32 %v1816_v25 }
0x1cdc   :  { %v3062_v26 = vpop.eup %3061 }
0x1cdd   :  { %1820 = vrot.lane.b32.xlu0 %v3062_v26, %s3349_s0 }
0x1d4f   :  { %v1821_v28 = vpop.permute.xlu0 %1820 }
0x1d50   :  { %v1823_v32 = vmul.f32 %v1821_v28, %v1818_v27 }
0x1d52   :  { %v1825_v33 = vadd.f32 %v1824_v30, %v1823_v32 }
0x1d54   :  { %1827 = vrot.lane.b32.xlu1 %v1825_v33, %s3349_s0 }
0x1dc6   :  { %v1828_v34 = vpop.permute.xlu1 %1827 }
0x1dc7   :  { %2834 = vmatmul.mubr.msk.f32.vlgmr.msra.gmra.mrb[18].mxu0 %vm377_vm6, %v1828_v34 }
0x1dc8   :  { %2960 = vmatpush3.bf16.msra.mxu0 %v3709_v13  ;;  %2849 = vmatprep.mubr.msk.f32.mxu0 %vm3345_vm4, %v3346_v12 }
0x1dc9   :  { %2961 = vmatprep.subr.bf16.mxu0 %v3344_v11 }
0x1dcc   :  { %2963 = vmatpush3.bf16.msra.mxu0 %v3726_v18 }
0x1dcd   :  { %2866 = vmatprep.subr.mxu0 %v3346_v12 }
0x1e9a   :  { %v1897_v35 = vpop.f32.mrb[18].mxu0 }
0x1e9b   :  { %v1898_v36 = vadd.f32 %v3777_v61, %v1897_v35  ;;  %v2835_v38 = vpop.f32.mrb[19].mxu0 }
0x1e9d   :  { %1902 = vst.msk [vmem:[#allocation19 + $0x2] sm:$0x3] %vm1581_vm8, %v1898_v36  ;;  %2839 = vmatmul.mubr.msk.f32.vlgmr.msra.gmra.mrb[16].mxu1 %vm1234_vm7, %v1898_v36 }
0x1e9e   :  { %2966 = vmatpush3.bf16.msra.mxu1 %v3720_v16  ;;  %2856 = vmatprep.mubr.msk.f32.mxu1 %vm3345_vm4, %v3346_v12 }
0x1e9f   :  { %2967 = vmatprep.subr.bf16.mxu1 %v3344_v11 }
0x1ea1   :  { %2857 = vmatmul.mubr.msk.f32.vlgmr.msra.gmra.mrb[18].mxu1 %vm377_vm6, %v1828_v34 }
0x1ea2   :  { %2969 = vmatpush3.bf16.msra.mxu1 %v3761_v54  ;;  %2863 = vmatprep.mubr.msk.f32.mxu1 %vm3345_vm4, %v3346_v12 }
0x1ea3   :  { %2970 = vmatprep.subr.bf16.mxu1 %v3344_v11 }
0x1f70   :  { %v1972_v39 = vpop.f32.mrb[16].mxu1 }
0x1f71   :  { %v1973_v40 = vadd.f32 %v3734_v20, %v1972_v39  ;;  %v2840_v42 = vpop.f32.mrb[17].mxu1 }
0x1f73   :  { %v1976_v43 = vmax.f32 %v1973_v40, 0.0 }
0x1f74   :  { %v2116_v44 = vpop.f32.mrb[18].mxu1 }
0x1f75   :  { %v2117_v45 = vadd.f32 %v3747_v37, %v2116_v44  ;;  %2850 = vmatmul.mubr.msk.f32.vlgmr.msra.gmra.mrb[20].mxu0 %vm286_vm5, %v1976_v43  ;;  %v2858_v46 = vpop.f32.mrb[19].mxu1 }
0x1f76   :  { %2867 = vmatpush3.msk.msra.mxu0 %vm194_vm0, %v3694_v5  ;;  %2868 = vmatprep.mubr.msk.f32.mxu0 %vm3345_vm4, %v3346_v12 }
0x1f77   :  { %2128 = vrot.lane.b32.xlu0 %v2117_v45, %s3347_s3  ;;  %2976 = vmatprep.subr.bf16.mxu0 %v3344_v11 }
0x1fe9   :  { %v2129_v31 = vpop.permute.xlu0 %2128 }
0x2048   :  { %v2046_v47 = vpop.f32.mrb[20].mxu0 }
0x2049   :  { %v2047_v48 = vadd.f32 %v3751_v41, %v2046_v47  ;;  %v2851_v49 = vpop.f32.mrb[21].mxu0 }
0x204b   :  { %v2120_v50 = vadd.f32 %v2117_v45, %v2047_v48 }
0x204d   :  { %v2608_v51 = vmul.f32 -1.442695, %v2120_v50 }
0x204f   :  { %3063 = vpow2.f32 %v2608_v51 }
0x2059   :  { %v3064_v52 = vpop.eup %3063 }
0x205a   :  { %v2124_v53 = vadd.f32 1.0, %v3064_v52 }
0x205c   :  { %3065 = vrcp.f32 %v2124_v53 }
0x2066   :  { %v3066_v55 = vpop.eup %3065 }
0x2067   :  { %v2131_v5 = vmul.f32 %v3066_v55, %v2129_v31  ;;  %v2138_v59 = vsub.f32 1.0, %v3066_v55  ;;  %v2144_v62 = vmul.f32 %v3066_v55, %v1825_v33 }
0x2069   :  { %2133 = vrot.lane.b32.xlu1 %v2131_v5, %s3348_s2 }
0x20db   :  { %v2134_v56 = vpop.permute.xlu1 %2133 }
0x20dc   :  { %v2136_v57 = vadd.f32 %v2134_v56, %v2047_v48 }
0x20de   :  { %3067 = vtanh.f32 %v2136_v57 }
0x20e8   :  { %v3068_v58 = vpop.eup %3067 }
0x20e9   :  { %2140 = vrot.lane.b32.xlu0 %v3068_v58, %s3349_s0 }
0x215b   :  { %v2141_v60 = vpop.permute.xlu0 %2140 }
0x215c   :  { %v2143_v63 = vmul.f32 %v2141_v60, %v2138_v59 }
0x215e   :  { %v2145_v0 = vadd.f32 %v2144_v62, %v2143_v63 }
0x2160   :  { %2147 = vrot.lane.b32.xlu1 %v2145_v0, %s3349_s0 }
0x21d2   :  { %v2148_v1 = vpop.permute.xlu1 %2147 }
0x21d3   :  { %2864 = vmatmul.mubr.msk.f32.vlgmr.msra.gmra.mrb[20].mxu1 %vm377_vm6, %v2148_v1 }
0x21d4   :  { %2972 = vmatpush3.bf16.msra.mxu1 %v3709_v13  ;;  %2879 = vmatprep.mubr.msk.f32.mxu1 %vm3345_vm4, %v3346_v12 }
0x21d5   :  { %2973 = vmatprep.subr.bf16.mxu1 %v3344_v11 }
0x21d8   :  { %2975 = vmatpush3.bf16.msra.mxu1 %v3726_v18 }
0x22a6   :  { %v2217_v2 = vpop.f32.mrb[20].mxu1 }
0x22a7   :  { %v2218_v3 = vadd.f32 %v3777_v61, %v2217_v2  ;;  %v2865_v4 = vpop.f32.mrb[21].mxu1 }
0x22a9   :  { %2222 = vst.msk [vmem:[#allocation19 + $0x4] sm:$0x3] %vm1581_vm8, %v2218_v3  ;;  %2869 = vmatmul.mubr.msk.f32.vlgmr.msra.gmra.mrb[22].mxu0 %vm1234_vm7, %v2218_v3 }
0x22aa   :  { %2978 = vmatpush3.bf16.msra.mxu0 %v3720_v16  ;;  %2886 = vmatprep.mubr.msk.f32.mxu0 %vm3345_vm4, %v3346_v12 }
0x22ab   :  { %2979 = vmatprep.subr.bf16.mxu0 %v3344_v11 }
0x22ad   :  { %2887 = vmatmul.mubr.msk.f32.vlgmr.msra.gmra.mrb[24].mxu0 %vm377_vm6, %v2148_v1 }
0x22ae   :  { %2981 = vmatpush3.bf16.msra.mxu0 %v3761_v54  ;;  %2893 = vmatprep.mubr.msk.f32.mxu0 %vm3345_vm4, %v3346_v12 }
0x237c   :  { %v2292_v13 = vpop.f32.mrb[22].mxu0 }
0x237d   :  { %v2293_v18 = vadd.f32 %v3734_v20, %v2292_v13  ;;  %v2870_v6 = vpop.f32.mrb[23].mxu0 }
0x237f   :  { %v2296_v21 = vmax.f32 %v2293_v18, 0.0 }
0x2380   :  { %v2436_v7 = vpop.f32.mrb[24].mxu0 }
0x2381   :  { %v2437_v16 = vadd.f32 %v3747_v37, %v2436_v7  ;;  %2880 = vmatmul.mubr.msk.f32.vlgmr.msra.gmra.mrb[22].mxu1 %vm286_vm5, %v2296_v21  ;;  %v2888_v8 = vpop.f32.mrb[25].mxu0 }
0x2383   :  { %2448 = vrot.lane.b32.xlu0 %v2437_v16, %s3347_s3 }
0x23f5   :  { %v2449_v17 = vpop.permute.xlu0 %2448 }
0x2454   :  { %v2366_v11 = vpop.f32.mrb[22].mxu1 }
0x2455   :  { %v2367_v9 = vadd.f32 %v3751_v41, %v2366_v11  ;;  %v2881_v54 = vpop.f32.mrb[23].mxu1 }
0x2457   :  { %v2440_v14 = vadd.f32 %v2437_v16, %v2367_v9 }
0x2459   :  { %v2614_v15 = vmul.f32 -1.442695, %v2440_v14 }
0x245b   :  { %3069 = vpow2.f32 %v2614_v15 }
0x2465   :  { %v3070_v12 = vpop.eup %3069 }
0x2466   :  { %v2444_v29 = vadd.f32 1.0, %v3070_v12 }
0x2468   :  { %3071 = vrcp.f32 %v2444_v29 }
0x2472   :  { %v3072_v20 = vpop.eup %3071 }
0x2473   :  { %v2451_v19 = vmul.f32 %v3072_v20, %v2449_v17  ;;  %v2458_v23 = vsub.f32 1.0, %v3072_v20  ;;  %v2464_v24 = vmul.f32 %v3072_v20, %v2145_v0 }
0x2475   :  { %2453 = vrot.lane.b32.xlu1 %v2451_v19, %s3348_s2 }
0x24e7   :  { %v2454_v37 = vpop.permute.xlu1 %2453 }
0x24e8   :  { %v2456_v10 = vadd.f32 %v2454_v37, %v2367_v9 }
0x24ea   :  { %3073 = vtanh.f32 %v2456_v10 }
0x24f4   :  { %v3074_v22 = vpop.eup %3073 }
0x24f5   :  { %2460 = vrot.lane.b32.xlu0 %v3074_v22, %s3349_s0 }
0x2567   :  { %v2461_v41 = vpop.permute.xlu0 %2460 }
0x2568   :  { %v2463_v25 = vmul.f32 %v2461_v41, %v2458_v23 }
0x256a   :  { %v2465_v26 = vadd.f32 %v2464_v24, %v2463_v25 }
0x256c   :  { %2467 = vrot.lane.b32.xlu1 %v2465_v26, %s3349_s0 }
0x25de   :  { %v2468_v27 = vpop.permute.xlu1 %2467 }
0x25df   :  { %2894 = vmatmul.mubr.msk.f32.vlgmr.msra.gmra.mrb[26].mxu0 %vm377_vm6, %v2468_v27 }
0x26b2   :  { %v2537_v28 = vpop.f32.mrb[26].mxu0 }
0x26b3   :  { %v2538_v30 = vadd.f32 %v3777_v61, %v2537_v28  ;;  %v2895_v32 = vpop.f32.mrb[27].mxu0 }
0x26b5   :  { %2542 = vst.msk [vmem:[#allocation19 + $0x6] sm:$0x3] %vm1581_vm8, %v2538_v30 }
0x26b6   :  { %3306 = shalt.err (!%p3303_p0)
}
0x26b7   :  { %s3307_s30 = scalar_lea.hbm %s3894_s16, 128 }
0x26b8   :  { %p3308_p1 = scmp.ne.s32.totalorder %s3894_s16, %s3307_s30  ;;  %p3311_p2 = scmp.lt.u32.totalorder %s3307_s30, %s3894_s16 }
0x26ba   :  { %p3313_p3 = pnand %p3311_p2, %p3308_p1 }
0x26bc   :  { %3316 = shalt.err (!%p3313_p3)
}
0x26bd   :  { %s3351_s0 = smov 2  }
0x26be   :  { %2554 = dma.vmem_to_hbm [thread:$0]  %s2549_s9, 128, %s3894_s16, [#allocation4], %s3348_s2, %s3348_s2, %s3351_s0  }
0x26bf   :  { %3329 = dma.done.wait [#allocation4], 128  }
0x26c0   :  { %3330 = vsyncadd [#allocation4], 4294967168 }
0x26c1   :  { %2558 = vsyncpa [#allocation3], 1 }
0x26c2   :  { %2559 = vsyncpa [#allocation6], 1 }
0x26c3   :  { %2560 = vsyncpa [#allocation9], 1 }
0x26c4   :  { %2561 = vsyncpa [#allocation12], 1 }
0x26c5   :  { %2562 = vsyncpa [#allocation15], 1 }
0x26c6   :  { %2563 = vsyncpa [#allocation18], 1 }
0x26c7   :  { %2564 = vsyncpa [#allocation4], 1 }

</bundles_post_ra>
